<compile_context>
chip_gen: v7x
topology: tpu7x:2x2x1
jax: 0.10.0
libtpu: 0.0.40
codegen_flags: <defaults>
</compile_context>

<pallas_src>
import jax
import jax.numpy as jnp
from jax.experimental import pallas as pl
from jax.experimental.pallas import tpu as pltpu

F32 = jnp.float32
BF16 = jnp.bfloat16
NODE_PAD = 128  # lane-dense node axis


# ----------------------------------------------------------------------------
# In-kernel helpers
# ----------------------------------------------------------------------------

def _mm(a, b):
    # MXU matmul: bf16 inputs, f32 accumulate.
    return jnp.dot(a.astype(BF16), b.astype(BF16), preferred_element_type=F32)


def _gather_onehot(idx_row, n_rows):
    # (n_rows, E) with one[n, e] = (n == idx[e]);  x(C,N) @ one -> gathered (C,E)
    e = idx_row.shape[-1]
    rows = jax.lax.broadcasted_iota(jnp.int32, (n_rows, e), 0)
    return jnp.where(rows == idx_row, 1.0, 0.0).astype(BF16)


def _scatter_onehot(idx_col, n_cols):
    # (E, n_cols) with one[e, n] = (idx[e] == n);  msg(C,E) @ one -> scatter-add (C,N)
    e = idx_col.shape[0]
    cols = jax.lax.broadcasted_iota(jnp.int32, (e, n_cols), 1)
    return jnp.where(idx_col == cols, 1.0, 0.0).astype(BF16)


# ----------------------------------------------------------------------------
# Fused RelGNNEncoder kernel (one grid step per GNN layer)
# ----------------------------------------------------------------------------

def relgnn_kernel(
    # node features, lane-major (C, N_pad), f32
    xu_ref, xt_ref, xi_ref,
    # int32 edge indices, row (1,E) and column (E,1) orientations
    src1r_ref, mid1r_ref, mid1c_ref, mid2r_ref, dst2r_ref, dst2c_ref,
    # layer-l weight slab (BlockSpec streams layer l per grid step); weights bf16, biases f32
    wl_ut_ref, wr_ut_ref, bl_ut_ref,     # SAGE user->txn
    wl_ti_ref, wr_ti_ref, bl_ti_ref,     # SAGE txn->item
    w1_ref, w2_ref, b12_ref,             # bridge fuse (b12 = b1 + b2)
    wkv_ref, bkv_ref, wq_ref, bq_ref,    # bridge attention (wq/bq pre-scaled by 1/sqrt(C))
    # running node features / final outputs (resident across layer grid steps)
    ou_ref, ot_ref, oi_ref,
):
    layer = pl.program_id(0)

    @pl.when(layer == 0)
    def _():
        ou_ref[...] = xu_ref[...]
        ot_ref[...] = xt_ref[...]
        oi_ref[...] = xi_ref[...]

    xu = ou_ref[...]                      # (C, NU)
    xt = ot_ref[...]                      # (C, NT)
    xi = oi_ref[...]                      # (C, NI)
    c = xt.shape[0]
    nu, nt, ni = xu.shape[1], xt.shape[1], xi.shape[1]

    # incidence operators from O(E) indices (built in vregs; nothing O(E*N) in HBM)
    g_u1 = _gather_onehot(src1r_ref[...], nu)    # (NU, E1)
    g_t1 = _gather_onehot(mid1r_ref[...], nt)    # (NT, E1)
    s_t1 = _scatter_onehot(mid1c_ref[...], nt)   # (E1, NT)
    g_t2 = _gather_onehot(mid2r_ref[...], nt)    # (NT, E2)
    g_i2 = _gather_onehot(dst2r_ref[...], ni)    # (NI, E2)
    s_i2 = _scatter_onehot(dst2c_ref[...], ni)   # (E2, NI)

    inv_deg_t = pl.reciprocal(
        jnp.maximum(jnp.sum(s_t1.astype(F32), axis=0, keepdims=True), 1.0), approx=True)
    inv_deg_i = pl.reciprocal(
        jnp.maximum(jnp.sum(s_i2.astype(F32), axis=0, keepdims=True), 1.0), approx=True)

    # edge gathers (h_src shared between the SAGE user->txn route and the bridge)
    h_src = _mm(xu, g_u1)                 # (C, E1) user feats on user->txn edges
    h_mid = _mm(xt, g_t1)                 # (C, E1) txn feats on user->txn edges
    t_on_e2 = _mm(xt, g_t2)               # (C, E2) txn feats on txn->item edges
    q_in = _mm(xi, g_i2)                  # (C, E2) item feats on txn->item edges

    # ---- direct route user -> txn : SAGEConv((C,C),C), mean aggregation ----
    mean_ut = _mm(h_src, s_t1) * inv_deg_t                                   # (C, NT)
    new_txn = _mm(wl_ut_ref[0], mean_ut) + _mm(wr_ut_ref[0], xt) + bl_ut_ref[0]

    # ---- direct route txn -> item : SAGEConv((C,C),C), mean aggregation ----
    mean_ti = _mm(t_on_e2, s_i2) * inv_deg_i                                 # (C, NI)
    item_direct = _mm(wl_ti_ref[0], mean_ti) + _mm(wr_ti_ref[0], xi) + bl_ti_ref[0]

    # ---- bridge route user -> txn -> item : fuse, index_add_, q/k/v attention ----
    h_fuse = _mm(w1_ref[0], h_mid) + _mm(w2_ref[0], h_src) + b12_ref[0]      # (C, E1)
    h_mid_agg = _mm(h_fuse, s_t1)                                            # (C, NT) index_add_
    km = _mm(h_mid_agg, g_t2)                                                # (C, E2)
    kv = _mm(wkv_ref[0], km) + bkv_ref[0]                                    # (2C, E2)
    k_e = kv[:c]
    v_e = kv[c:]
    q_e = _mm(wq_ref[0], q_in) + bq_ref[0]                                   # (C, E2)

    # lane-major scores; GLOBAL softmax over the edge axis (torch.softmax(dim=0))
    scores = jnp.sum(q_e * k_e, axis=0, keepdims=True)                       # (1, E2)
    m = jnp.max(scores, axis=1, keepdims=True)
    e = jnp.exp(scores - m)
    alpha = e * pl.reciprocal(jnp.sum(e, axis=1, keepdims=True), approx=True)
    msg = v_e * alpha                                                        # (C, E2)
    item_bridge = _mm(msg, s_i2)                                             # (C, NI) index_add_

    # per-layer aggregation: sum messages per dst node type; 'user' has no incoming
    # route and keeps its previous features (ou_ref untouched after init).
    ot_ref[...] = new_txn
    oi_ref[...] = item_direct + item_bridge


# ----------------------------------------------------------------------------
# Wrapper
# ----------------------------------------------------------------------------

_WEIGHT_NAMES = ["wl_ut", "wr_ut", "bl_ut", "wl_ti", "wr_ti", "bl_ti",
                 "w1", "w2", "b12", "wkv", "bkv", "wq", "bq"]


def _to_lane_major(x, node_pad):
    # (N, C) -> (C, node_pad), zero padded on the node (lane) axis
    n = x.shape[0]
    return jnp.pad(x.T.astype(F32), ((0, 0), (0, node_pad - n)))


def _const_spec(shape):
    zeros = (0,) * len(shape)
    return pl.BlockSpec(tuple(shape), lambda l: zeros)


def _layer_spec(shape):
    tail = (0,) * (len(shape) - 1)
    return pl.BlockSpec((1,) + tuple(shape[1:]), lambda l: (l,) + tail)


def relgnn_forward(params, x_dict, edges, *, channels, num_layers, node_pad=NODE_PAD):
    xu = _to_lane_major(x_dict["user"], node_pad)
    xt = _to_lane_major(x_dict["txn"], node_pad)
    xi = _to_lane_major(x_dict["item"], node_pad)

    def row(v):
        return v.astype(jnp.int32).reshape(1, -1)

    def col(v):
        return v.astype(jnp.int32).reshape(-1, 1)

    idx_inputs = [row(edges["src1"]), row(edges["mid1"]), col(edges["mid1"]),
                  row(edges["mid2"]), row(edges["dst2"]), col(edges["dst2"])]
    weight_inputs = [params[n] for n in _WEIGHT_NAMES]
    inputs = [xu, xt, xi] + idx_inputs + weight_inputs

    in_specs = ([_const_spec(a.shape) for a in [xu, xt, xi] + idx_inputs]
                + [_layer_spec(w.shape) for w in weight_inputs])
    out_shape = tuple(jax.ShapeDtypeStruct((channels, node_pad), F32) for _ in range(3))
    out_specs = tuple(_const_spec((channels, node_pad)) for _ in range(3))

    fn = pl.pallas_call(
        relgnn_kernel,
        grid=(num_layers,),
        in_specs=in_specs,
        out_specs=out_specs,
        out_shape=out_shape,
        compiler_params=pltpu.CompilerParams(
            # layer axis is a dependency chain -> sequential
            dimension_semantics=("arbitrary",),
            vmem_limit_bytes=32 * 1024 * 1024,
        ),
    )
    ou, ot, oi = fn(*inputs)

    # strip node-lane padding and go back to the module's (N, C) convention
    return {
        "user": ou[:, : x_dict["user"].shape[0]].T,
        "txn":  ot[:, : x_dict["txn"].shape[0]].T,
        "item": oi[:, : x_dict["item"].shape[0]].T,
    }


# ----------------------------------------------------------------------------
# Parameter init (torch nn.Linear default bounds), [C_out, C_in] layout, bf16 weights
# ----------------------------------------------------------------------------

def _uniform(key, shape, fan_in):
    bound = 1.0 / (fan_in ** 0.5)
    return jax.random.uniform(key, shape, F32, -bound, bound)


def init_layer(key, c):
    ks = jax.random.split(key, 16)
    wl_ut = _uniform(ks[0], (c, c), c); bl_ut = _uniform(ks[1], (c, 1), c)
    wr_ut = _uniform(ks[2], (c, c), c)
    wl_ti = _uniform(ks[3], (c, c), c); bl_ti = _uniform(ks[4], (c, 1), c)
    wr_ti = _uniform(ks[5], (c, c), c)
    w1 = _uniform(ks[6], (c, c), c); b1 = _uniform(ks[7], (c, 1), c)
    w2 = _uniform(ks[8], (c, c), c); b2 = _uniform(ks[9], (c, 1), c)
    wq = _uniform(ks[10], (c, c), c); bq = _uniform(ks[11], (c, 1), c)
    wk = _uniform(ks[12], (c, c), c); bk = _uniform(ks[13], (c, 1), c)
    wv = _uniform(ks[14], (c, c), c); bv = _uniform(ks[15], (c, 1), c)
    scale = 1.0 / (c ** 0.5)
    return dict(
        wl_ut=wl_ut.astype(BF16), wr_ut=wr_ut.astype(BF16), bl_ut=bl_ut,
        wl_ti=wl_ti.astype(BF16), wr_ti=wr_ti.astype(BF16), bl_ti=bl_ti,
        w1=w1.astype(BF16), w2=w2.astype(BF16), b12=b1 + b2,
        wkv=jnp.concatenate([wk, wv], axis=0).astype(BF16),
        bkv=jnp.concatenate([bk, bv], axis=0),
        wq=(wq * scale).astype(BF16), bq=bq * scale,
    )


# ----------------------------------------------------------------------------
# Main
# ----------------------------------------------------------------------------

if __name__ == "__main__":
    channels = 32
    num_layers = 2
    num_user, num_txn, num_item = 16, 24, 16
    E1, E2 = 40, 48  # user->txn edges, txn->item edges
    # atomic routes: (user, None, txn), (txn, None, item), (user, txn, item)

    key = jax.random.PRNGKey(0)
    k_xu, k_xt, k_xi, k_e1s, k_e1d, k_e2s, k_e2d, k_layers = jax.random.split(key, 8)

    x_dict = {
        "user": jax.random.normal(k_xu, (num_user, channels), F32),
        "txn":  jax.random.normal(k_xt, (num_txn, channels), F32),
        "item": jax.random.normal(k_xi, (num_item, channels), F32),
    }
    edges = {
        "src1": jax.random.randint(k_e1s, (E1,), 0, num_user, jnp.int32),  # user side
        "mid1": jax.random.randint(k_e1d, (E1,), 0, num_txn, jnp.int32),   # txn side
        "mid2": jax.random.randint(k_e2s, (E2,), 0, num_txn, jnp.int32),   # txn side
        "dst2": jax.random.randint(k_e2d, (E2,), 0, num_item, jnp.int32),  # item side
    }

    layer_keys = jax.random.split(k_layers, num_layers)
    layers = [init_layer(lk, channels) for lk in layer_keys]
    params = {name: jnp.stack([lay[name] for lay in layers], axis=0) for name in layers[0]}

    out_dict = relgnn_forward(params, x_dict, edges,
                              channels=channels, num_layers=num_layers)
    out_dict = jax.block_until_ready(out_dict)

    assert out_dict["user"].shape == (num_user, channels)
    assert out_dict["txn"].shape == (num_txn, channels)
    assert out_dict["item"].shape == (num_item, channels)
    for v in out_dict.values():
        assert bool(jnp.all(jnp.isfinite(v)))
    print("KERNEL_OK")
</pallas_src>

<mosaic_0001>
module attributes {stable_mosaic.version = 11 : i64} {
  func.func @relgnn_kernel(%arg0: i32, %arg1: memref<32x128xf32, #tpu.memory_space<vmem>>, %arg2: memref<32x128xf32, #tpu.memory_space<vmem>>, %arg3: memref<32x128xf32, #tpu.memory_space<vmem>>, %arg4: memref<1x40xi32, #tpu.memory_space<vmem>>, %arg5: memref<1x40xi32, #tpu.memory_space<vmem>>, %arg6: memref<40x1xi32, #tpu.memory_space<vmem>>, %arg7: memref<1x48xi32, #tpu.memory_space<vmem>>, %arg8: memref<1x48xi32, #tpu.memory_space<vmem>>, %arg9: memref<48x1xi32, #tpu.memory_space<vmem>>, %arg10: memref<1x32x32xbf16, #tpu.memory_space<vmem>>, %arg11: memref<1x32x32xbf16, #tpu.memory_space<vmem>>, %arg12: memref<1x32x1xf32, #tpu.memory_space<vmem>>, %arg13: memref<1x32x32xbf16, #tpu.memory_space<vmem>>, %arg14: memref<1x32x32xbf16, #tpu.memory_space<vmem>>, %arg15: memref<1x32x1xf32, #tpu.memory_space<vmem>>, %arg16: memref<1x32x32xbf16, #tpu.memory_space<vmem>>, %arg17: memref<1x32x32xbf16, #tpu.memory_space<vmem>>, %arg18: memref<1x32x1xf32, #tpu.memory_space<vmem>>, %arg19: memref<1x64x32xbf16, #tpu.memory_space<vmem>>, %arg20: memref<1x64x1xf32, #tpu.memory_space<vmem>>, %arg21: memref<1x32x32xbf16, #tpu.memory_space<vmem>>, %arg22: memref<1x32x1xf32, #tpu.memory_space<vmem>>, %arg23: memref<32x128xf32, #tpu.memory_space<vmem>>, %arg24: memref<32x128xf32, #tpu.memory_space<vmem>>, %arg25: memref<32x128xf32, #tpu.memory_space<vmem>>) attributes {dimension_semantics = [#tpu.dimension_semantics<arbitrary>], iteration_bounds = array<i64: 2>, scalar_prefetch = 0 : i64, scratch_operands = 0 : i64, tpu.core_type = #tpu.core_type<tc>, window_params = [{pipeline_mode = #tpu.pipeline_mode<synchronous>, transform_indices = @transform_0, window_bounds = array<i64: 32, 128>}, {pipeline_mode = #tpu.pipeline_mode<synchronous>, transform_indices = @transform_1, window_bounds = array<i64: 32, 128>}, {pipeline_mode = #tpu.pipeline_mode<synchronous>, transform_indices = @transform_2, window_bounds = array<i64: 32, 128>}, {pipeline_mode = #tpu.pipeline_mode<synchronous>, transform_indices = @transform_3, window_bounds = array<i64: 1, 40>}, {pipeline_mode = #tpu.pipeline_mode<synchronous>, transform_indices = @transform_4, window_bounds = array<i64: 1, 40>}, {pipeline_mode = #tpu.pipeline_mode<synchronous>, transform_indices = @transform_5, window_bounds = array<i64: 40, 1>}, {pipeline_mode = #tpu.pipeline_mode<synchronous>, transform_indices = @transform_6, window_bounds = array<i64: 1, 48>}, {pipeline_mode = #tpu.pipeline_mode<synchronous>, transform_indices = @transform_7, window_bounds = array<i64: 1, 48>}, {pipeline_mode = #tpu.pipeline_mode<synchronous>, transform_indices = @transform_8, window_bounds = array<i64: 48, 1>}, {transform_indices = @transform_9, window_bounds = array<i64: 1, 32, 32>}, {transform_indices = @transform_10, window_bounds = array<i64: 1, 32, 32>}, {transform_indices = @transform_11, window_bounds = array<i64: 1, 32, 1>}, {transform_indices = @transform_12, window_bounds = array<i64: 1, 32, 32>}, {transform_indices = @transform_13, window_bounds = array<i64: 1, 32, 32>}, {transform_indices = @transform_14, window_bounds = array<i64: 1, 32, 1>}, {transform_indices = @transform_15, window_bounds = array<i64: 1, 32, 32>}, {transform_indices = @transform_16, window_bounds = array<i64: 1, 32, 32>}, {transform_indices = @transform_17, window_bounds = array<i64: 1, 32, 1>}, {transform_indices = @transform_18, window_bounds = array<i64: 1, 64, 32>}, {transform_indices = @transform_19, window_bounds = array<i64: 1, 64, 1>}, {transform_indices = @transform_20, window_bounds = array<i64: 1, 32, 32>}, {transform_indices = @transform_21, window_bounds = array<i64: 1, 32, 1>}, {pipeline_mode = #tpu.pipeline_mode<synchronous>, transform_indices = @transform_22, window_bounds = array<i64: 32, 128>}, {pipeline_mode = #tpu.pipeline_mode<synchronous>, transform_indices = @transform_23, window_bounds = array<i64: 32, 128>}, {pipeline_mode = #tpu.pipeline_mode<synchronous>, transform_indices = @transform_24, window_bounds = array<i64: 32, 128>}]} {
    %c0_i32 = arith.constant 0 : i32
    %0 = arith.cmpi eq, %arg0, %c0_i32 : i32
    %1 = arith.extui %0 : i1 to i32
    %c0_i32_0 = arith.constant 0 : i32
    %2 = arith.cmpi ne, %1, %c0_i32_0 : i32
    scf.if %2 {
      %c0_96 = arith.constant 0 : index
      %c0_97 = arith.constant 0 : index
      %163 = vector.load %arg1[%c0_96, %c0_97] : memref<32x128xf32, #tpu.memory_space<vmem>>, vector<32x128xf32>
      %c0_98 = arith.constant 0 : index
      %c0_99 = arith.constant 0 : index
      %164 = vector.load %arg23[%c0_98, %c0_99] : memref<32x128xf32, #tpu.memory_space<vmem>>, vector<32x128xf32>
      tpu.vector_store %arg23[%c0_98, %c0_99], %163 {strides = array<i32>} : memref<32x128xf32, #tpu.memory_space<vmem>>, vector<32x128xf32>,
      %c0_100 = arith.constant 0 : index
      %c0_101 = arith.constant 0 : index
      %165 = vector.load %arg2[%c0_100, %c0_101] : memref<32x128xf32, #tpu.memory_space<vmem>>, vector<32x128xf32>
      %c0_102 = arith.constant 0 : index
      %c0_103 = arith.constant 0 : index
      %166 = vector.load %arg24[%c0_102, %c0_103] : memref<32x128xf32, #tpu.memory_space<vmem>>, vector<32x128xf32>
      tpu.vector_store %arg24[%c0_102, %c0_103], %165 {strides = array<i32>} : memref<32x128xf32, #tpu.memory_space<vmem>>, vector<32x128xf32>,
      %c0_104 = arith.constant 0 : index
      %c0_105 = arith.constant 0 : index
      %167 = vector.load %arg3[%c0_104, %c0_105] : memref<32x128xf32, #tpu.memory_space<vmem>>, vector<32x128xf32>
      %c0_106 = arith.constant 0 : index
      %c0_107 = arith.constant 0 : index
      %168 = vector.load %arg25[%c0_106, %c0_107] : memref<32x128xf32, #tpu.memory_space<vmem>>, vector<32x128xf32>
      tpu.vector_store %arg25[%c0_106, %c0_107], %167 {strides = array<i32>} : memref<32x128xf32, #tpu.memory_space<vmem>>, vector<32x128xf32>,
    } else {
    }
    %c0 = arith.constant 0 : index
    %c0_1 = arith.constant 0 : index
    %3 = vector.load %arg23[%c0, %c0_1] : memref<32x128xf32, #tpu.memory_space<vmem>>, vector<32x128xf32>
    %c0_2 = arith.constant 0 : index
    %c0_3 = arith.constant 0 : index
    %4 = vector.load %arg24[%c0_2, %c0_3] : memref<32x128xf32, #tpu.memory_space<vmem>>, vector<32x128xf32>
    %c0_4 = arith.constant 0 : index
    %c0_5 = arith.constant 0 : index
    %5 = vector.load %arg25[%c0_4, %c0_5] : memref<32x128xf32, #tpu.memory_space<vmem>>, vector<32x128xf32>
    %c0_6 = arith.constant 0 : index
    %c0_7 = arith.constant 0 : index
    %6 = vector.load %arg4[%c0_6, %c0_7] : memref<1x40xi32, #tpu.memory_space<vmem>>, vector<1x40xi32>
    %7 = tpu.iota {dimensions = array<i32: 0>} : vector<128x40xi32>
    %8 = vector.broadcast %6 : vector<1x40xi32> to vector<128x40xi32>
    %9 = arith.cmpi eq, %7, %8 : vector<128x40xi32>
    %cst = arith.constant 1.000000e+00 : f32
    %cst_8 = arith.constant 0.000000e+00 : f32
    %10 = vector.broadcast %cst : f32 to vector<128x40xf32>
    %11 = vector.broadcast %cst_8 : f32 to vector<128x40xf32>
    %12 = arith.select %9, %10, %11 : vector<128x40xi1>, vector<128x40xf32>
    %13 = arith.truncf %12 : vector<128x40xf32> to vector<128x40xbf16>
    %c0_9 = arith.constant 0 : index
    %c0_10 = arith.constant 0 : index
    %14 = vector.load %arg5[%c0_9, %c0_10] : memref<1x40xi32, #tpu.memory_space<vmem>>, vector<1x40xi32>
    %15 = tpu.iota {dimensions = array<i32: 0>} : vector<128x40xi32>
    %16 = vector.broadcast %14 : vector<1x40xi32> to vector<128x40xi32>
    %17 = arith.cmpi eq, %15, %16 : vector<128x40xi32>
    %cst_11 = arith.constant 1.000000e+00 : f32
    %cst_12 = arith.constant 0.000000e+00 : f32
    %18 = vector.broadcast %cst_11 : f32 to vector<128x40xf32>
    %19 = vector.broadcast %cst_12 : f32 to vector<128x40xf32>
    %20 = arith.select %17, %18, %19 : vector<128x40xi1>, vector<128x40xf32>
    %21 = arith.truncf %20 : vector<128x40xf32> to vector<128x40xbf16>
    %c0_13 = arith.constant 0 : index
    %c0_14 = arith.constant 0 : index
    %22 = vector.load %arg6[%c0_13, %c0_14] : memref<40x1xi32, #tpu.memory_space<vmem>>, vector<40x1xi32>
    %23 = tpu.iota {dimensions = array<i32: 1>} : vector<40x128xi32>
    %24 = vector.broadcast %22 : vector<40x1xi32> to vector<40x128xi32>
    %25 = arith.cmpi eq, %24, %23 : vector<40x128xi32>
    %cst_15 = arith.constant 1.000000e+00 : f32
    %cst_16 = arith.constant 0.000000e+00 : f32
    %26 = vector.broadcast %cst_15 : f32 to vector<40x128xf32>
    %27 = vector.broadcast %cst_16 : f32 to vector<40x128xf32>
    %28 = arith.select %25, %26, %27 : vector<40x128xi1>, vector<40x128xf32>
    %29 = arith.truncf %28 : vector<40x128xf32> to vector<40x128xbf16>
    %c0_17 = arith.constant 0 : index
    %c0_18 = arith.constant 0 : index
    %30 = vector.load %arg7[%c0_17, %c0_18] : memref<1x48xi32, #tpu.memory_space<vmem>>, vector<1x48xi32>
    %31 = tpu.iota {dimensions = array<i32: 0>} : vector<128x48xi32>
    %32 = vector.broadcast %30 : vector<1x48xi32> to vector<128x48xi32>
    %33 = arith.cmpi eq, %31, %32 : vector<128x48xi32>
    %cst_19 = arith.constant 1.000000e+00 : f32
    %cst_20 = arith.constant 0.000000e+00 : f32
    %34 = vector.broadcast %cst_19 : f32 to vector<128x48xf32>
    %35 = vector.broadcast %cst_20 : f32 to vector<128x48xf32>
    %36 = arith.select %33, %34, %35 : vector<128x48xi1>, vector<128x48xf32>
    %37 = arith.truncf %36 : vector<128x48xf32> to vector<128x48xbf16>
    %c0_21 = arith.constant 0 : index
    %c0_22 = arith.constant 0 : index
    %38 = vector.load %arg8[%c0_21, %c0_22] : memref<1x48xi32, #tpu.memory_space<vmem>>, vector<1x48xi32>
    %39 = tpu.iota {dimensions = array<i32: 0>} : vector<128x48xi32>
    %40 = vector.broadcast %38 : vector<1x48xi32> to vector<128x48xi32>
    %41 = arith.cmpi eq, %39, %40 : vector<128x48xi32>
    %cst_23 = arith.constant 1.000000e+00 : f32
    %cst_24 = arith.constant 0.000000e+00 : f32
    %42 = vector.broadcast %cst_23 : f32 to vector<128x48xf32>
    %43 = vector.broadcast %cst_24 : f32 to vector<128x48xf32>
    %44 = arith.select %41, %42, %43 : vector<128x48xi1>, vector<128x48xf32>
    %45 = arith.truncf %44 : vector<128x48xf32> to vector<128x48xbf16>
    %c0_25 = arith.constant 0 : index
    %c0_26 = arith.constant 0 : index
    %46 = vector.load %arg9[%c0_25, %c0_26] : memref<48x1xi32, #tpu.memory_space<vmem>>, vector<48x1xi32>
    %47 = tpu.iota {dimensions = array<i32: 1>} : vector<48x128xi32>
    %48 = vector.broadcast %46 : vector<48x1xi32> to vector<48x128xi32>
    %49 = arith.cmpi eq, %48, %47 : vector<48x128xi32>
    %cst_27 = arith.constant 1.000000e+00 : f32
    %cst_28 = arith.constant 0.000000e+00 : f32
    %50 = vector.broadcast %cst_27 : f32 to vector<48x128xf32>
    %51 = vector.broadcast %cst_28 : f32 to vector<48x128xf32>
    %52 = arith.select %49, %50, %51 : vector<48x128xi1>, vector<48x128xf32>
    %53 = arith.truncf %52 : vector<48x128xf32> to vector<48x128xbf16>
    %54 = arith.extf %29 : vector<40x128xbf16> to vector<40x128xf32>
    %cst_29 = arith.constant dense<0.000000e+00> : vector<128xf32>
    %55 = vector.multi_reduction <add>, %54, %cst_29 [0] : vector<40x128xf32> to vector<128xf32>
    %56 = vector.shape_cast %55 : vector<128xf32> to vector<1x128xf32>
    %cst_30 = arith.constant 1.000000e+00 : f32
    %57 = vector.broadcast %cst_30 : f32 to vector<1x128xf32>
    %58 = arith.maximumf %56, %57 : vector<1x128xf32>
    %59 = tpu.reciprocal %58 {approx = true} : vector<1x128xf32> -> vector<1x128xf32>
    %60 = arith.extf %53 : vector<48x128xbf16> to vector<48x128xf32>
    %cst_31 = arith.constant dense<0.000000e+00> : vector<128xf32>
    %61 = vector.multi_reduction <add>, %60, %cst_31 [0] : vector<48x128xf32> to vector<128xf32>
    %62 = vector.shape_cast %61 : vector<128xf32> to vector<1x128xf32>
    %cst_32 = arith.constant 1.000000e+00 : f32
    %63 = vector.broadcast %cst_32 : f32 to vector<1x128xf32>
    %64 = arith.maximumf %62, %63 : vector<1x128xf32>
    %65 = tpu.reciprocal %64 {approx = true} : vector<1x128xf32> -> vector<1x128xf32>
    %66 = arith.truncf %3 : vector<32x128xf32> to vector<32x128xbf16>
    %cst_33 = arith.constant dense<0.000000e+00> : vector<32x40xf32>
    %67 = tpu.matmul %66, %13, %cst_33 {dimension_numbers = #tpu.dot_dimension_numbers<[1], [0], [0], [1], [0, 0, 1, 1], [], []>} : vector<32x128xbf16>, vector<128x40xbf16>, vector<32x40xf32> -> vector<32x40xf32>
    %68 = arith.truncf %4 : vector<32x128xf32> to vector<32x128xbf16>
    %cst_34 = arith.constant dense<0.000000e+00> : vector<32x40xf32>
    %69 = tpu.matmul %68, %21, %cst_34 {dimension_numbers = #tpu.dot_dimension_numbers<[1], [0], [0], [1], [0, 0, 1, 1], [], []>} : vector<32x128xbf16>, vector<128x40xbf16>, vector<32x40xf32> -> vector<32x40xf32>
    %70 = arith.truncf %4 : vector<32x128xf32> to vector<32x128xbf16>
    %cst_35 = arith.constant dense<0.000000e+00> : vector<32x48xf32>
    %71 = tpu.matmul %70, %37, %cst_35 {dimension_numbers = #tpu.dot_dimension_numbers<[1], [0], [0], [1], [0, 0, 1, 1], [], []>} : vector<32x128xbf16>, vector<128x48xbf16>, vector<32x48xf32> -> vector<32x48xf32>
    %72 = arith.truncf %5 : vector<32x128xf32> to vector<32x128xbf16>
    %cst_36 = arith.constant dense<0.000000e+00> : vector<32x48xf32>
    %73 = tpu.matmul %72, %45, %cst_36 {dimension_numbers = #tpu.dot_dimension_numbers<[1], [0], [0], [1], [0, 0, 1, 1], [], []>} : vector<32x128xbf16>, vector<128x48xbf16>, vector<32x48xf32> -> vector<32x48xf32>
    %74 = arith.truncf %67 : vector<32x40xf32> to vector<32x40xbf16>
    %cst_37 = arith.constant dense<0.000000e+00> : vector<32x128xf32>
    %75 = tpu.matmul %74, %29, %cst_37 {dimension_numbers = #tpu.dot_dimension_numbers<[1], [0], [0], [1], [0, 0, 1, 1], [], []>} : vector<32x40xbf16>, vector<40x128xbf16>, vector<32x128xf32> -> vector<32x128xf32>
    %76 = vector.broadcast %59 : vector<1x128xf32> to vector<32x128xf32>
    %77 = arith.mulf %75, %76 : vector<32x128xf32>
    %c0_38 = arith.constant 0 : index
    %c0_39 = arith.constant 0 : index
    %c0_40 = arith.constant 0 : index
    %78 = vector.load %arg10[%c0_38, %c0_39, %c0_40] : memref<1x32x32xbf16, #tpu.memory_space<vmem>>, vector<1x32x32xbf16>
    %79 = vector.shape_cast %78 : vector<1x32x32xbf16> to vector<32x32xbf16>
    %80 = arith.truncf %77 : vector<32x128xf32> to vector<32x128xbf16>
    %cst_41 = arith.constant dense<0.000000e+00> : vector<32x128xf32>
    %81 = tpu.matmul %79, %80, %cst_41 {dimension_numbers = #tpu.dot_dimension_numbers<[1], [0], [0], [1], [0, 0, 1, 1], [], []>} : vector<32x32xbf16>, vector<32x128xbf16>, vector<32x128xf32> -> vector<32x128xf32>
    %c0_42 = arith.constant 0 : index
    %c0_43 = arith.constant 0 : index
    %c0_44 = arith.constant 0 : index
    %82 = vector.load %arg11[%c0_42, %c0_43, %c0_44] : memref<1x32x32xbf16, #tpu.memory_space<vmem>>, vector<1x32x32xbf16>
    %83 = vector.shape_cast %82 : vector<1x32x32xbf16> to vector<32x32xbf16>
    %84 = arith.truncf %4 : vector<32x128xf32> to vector<32x128xbf16>
    %cst_45 = arith.constant dense<0.000000e+00> : vector<32x128xf32>
    %85 = tpu.matmul %83, %84, %cst_45 {dimension_numbers = #tpu.dot_dimension_numbers<[1], [0], [0], [1], [0, 0, 1, 1], [], []>} : vector<32x32xbf16>, vector<32x128xbf16>, vector<32x128xf32> -> vector<32x128xf32>
    %86 = arith.addf %81, %85 : vector<32x128xf32>
    %c0_46 = arith.constant 0 : index
    %c0_47 = arith.constant 0 : index
    %c0_48 = arith.constant 0 : index
    %87 = vector.load %arg12[%c0_46, %c0_47, %c0_48] : memref<1x32x1xf32, #tpu.memory_space<vmem>>, vector<1x32x1xf32>
    %88 = vector.shape_cast %87 : vector<1x32x1xf32> to vector<32x1xf32>
    %89 = vector.broadcast %88 : vector<32x1xf32> to vector<32x128xf32>
    %90 = arith.addf %86, %89 : vector<32x128xf32>
    %91 = arith.truncf %71 : vector<32x48xf32> to vector<32x48xbf16>
    %cst_49 = arith.constant dense<0.000000e+00> : vector<32x128xf32>
    %92 = tpu.matmul %91, %53, %cst_49 {dimension_numbers = #tpu.dot_dimension_numbers<[1], [0], [0], [1], [0, 0, 1, 1], [], []>} : vector<32x48xbf16>, vector<48x128xbf16>, vector<32x128xf32> -> vector<32x128xf32>
    %93 = vector.broadcast %65 : vector<1x128xf32> to vector<32x128xf32>
    %94 = arith.mulf %92, %93 : vector<32x128xf32>
    %c0_50 = arith.constant 0 : index
    %c0_51 = arith.constant 0 : index
    %c0_52 = arith.constant 0 : index
    %95 = vector.load %arg13[%c0_50, %c0_51, %c0_52] : memref<1x32x32xbf16, #tpu.memory_space<vmem>>, vector<1x32x32xbf16>
    %96 = vector.shape_cast %95 : vector<1x32x32xbf16> to vector<32x32xbf16>
    %97 = arith.truncf %94 : vector<32x128xf32> to vector<32x128xbf16>
    %cst_53 = arith.constant dense<0.000000e+00> : vector<32x128xf32>
    %98 = tpu.matmul %96, %97, %cst_53 {dimension_numbers = #tpu.dot_dimension_numbers<[1], [0], [0], [1], [0, 0, 1, 1], [], []>} : vector<32x32xbf16>, vector<32x128xbf16>, vector<32x128xf32> -> vector<32x128xf32>
    %c0_54 = arith.constant 0 : index
    %c0_55 = arith.constant 0 : index
    %c0_56 = arith.constant 0 : index
    %99 = vector.load %arg14[%c0_54, %c0_55, %c0_56] : memref<1x32x32xbf16, #tpu.memory_space<vmem>>, vector<1x32x32xbf16>
    %100 = vector.shape_cast %99 : vector<1x32x32xbf16> to vector<32x32xbf16>
    %101 = arith.truncf %5 : vector<32x128xf32> to vector<32x128xbf16>
    %cst_57 = arith.constant dense<0.000000e+00> : vector<32x128xf32>
    %102 = tpu.matmul %100, %101, %cst_57 {dimension_numbers = #tpu.dot_dimension_numbers<[1], [0], [0], [1], [0, 0, 1, 1], [], []>} : vector<32x32xbf16>, vector<32x128xbf16>, vector<32x128xf32> -> vector<32x128xf32>
    %103 = arith.addf %98, %102 : vector<32x128xf32>
    %c0_58 = arith.constant 0 : index
    %c0_59 = arith.constant 0 : index
    %c0_60 = arith.constant 0 : index
    %104 = vector.load %arg15[%c0_58, %c0_59, %c0_60] : memref<1x32x1xf32, #tpu.memory_space<vmem>>, vector<1x32x1xf32>
    %105 = vector.shape_cast %104 : vector<1x32x1xf32> to vector<32x1xf32>
    %106 = vector.broadcast %105 : vector<32x1xf32> to vector<32x128xf32>
    %107 = arith.addf %103, %106 : vector<32x128xf32>
    %c0_61 = arith.constant 0 : index
    %c0_62 = arith.constant 0 : index
    %c0_63 = arith.constant 0 : index
    %108 = vector.load %arg16[%c0_61, %c0_62, %c0_63] : memref<1x32x32xbf16, #tpu.memory_space<vmem>>, vector<1x32x32xbf16>
    %109 = vector.shape_cast %108 : vector<1x32x32xbf16> to vector<32x32xbf16>
    %110 = arith.truncf %69 : vector<32x40xf32> to vector<32x40xbf16>
    %cst_64 = arith.constant dense<0.000000e+00> : vector<32x40xf32>
    %111 = tpu.matmul %109, %110, %cst_64 {dimension_numbers = #tpu.dot_dimension_numbers<[1], [0], [0], [1], [0, 0, 1, 1], [], []>} : vector<32x32xbf16>, vector<32x40xbf16>, vector<32x40xf32> -> vector<32x40xf32>
    %c0_65 = arith.constant 0 : index
    %c0_66 = arith.constant 0 : index
    %c0_67 = arith.constant 0 : index
    %112 = vector.load %arg17[%c0_65, %c0_66, %c0_67] : memref<1x32x32xbf16, #tpu.memory_space<vmem>>, vector<1x32x32xbf16>
    %113 = vector.shape_cast %112 : vector<1x32x32xbf16> to vector<32x32xbf16>
    %114 = arith.truncf %67 : vector<32x40xf32> to vector<32x40xbf16>
    %cst_68 = arith.constant dense<0.000000e+00> : vector<32x40xf32>
    %115 = tpu.matmul %113, %114, %cst_68 {dimension_numbers = #tpu.dot_dimension_numbers<[1], [0], [0], [1], [0, 0, 1, 1], [], []>} : vector<32x32xbf16>, vector<32x40xbf16>, vector<32x40xf32> -> vector<32x40xf32>
    %116 = arith.addf %111, %115 : vector<32x40xf32>
    %c0_69 = arith.constant 0 : index
    %c0_70 = arith.constant 0 : index
    %c0_71 = arith.constant 0 : index
    %117 = vector.load %arg18[%c0_69, %c0_70, %c0_71] : memref<1x32x1xf32, #tpu.memory_space<vmem>>, vector<1x32x1xf32>
    %118 = vector.shape_cast %117 : vector<1x32x1xf32> to vector<32x1xf32>
    %119 = vector.broadcast %118 : vector<32x1xf32> to vector<32x40xf32>
    %120 = arith.addf %116, %119 : vector<32x40xf32>
    %121 = arith.truncf %120 : vector<32x40xf32> to vector<32x40xbf16>
    %cst_72 = arith.constant dense<0.000000e+00> : vector<32x128xf32>
    %122 = tpu.matmul %121, %29, %cst_72 {dimension_numbers = #tpu.dot_dimension_numbers<[1], [0], [0], [1], [0, 0, 1, 1], [], []>} : vector<32x40xbf16>, vector<40x128xbf16>, vector<32x128xf32> -> vector<32x128xf32>
    %123 = arith.truncf %122 : vector<32x128xf32> to vector<32x128xbf16>
    %cst_73 = arith.constant dense<0.000000e+00> : vector<32x48xf32>
    %124 = tpu.matmul %123, %37, %cst_73 {dimension_numbers = #tpu.dot_dimension_numbers<[1], [0], [0], [1], [0, 0, 1, 1], [], []>} : vector<32x128xbf16>, vector<128x48xbf16>, vector<32x48xf32> -> vector<32x48xf32>
    %c0_74 = arith.constant 0 : index
    %c0_75 = arith.constant 0 : index
    %c0_76 = arith.constant 0 : index
    %125 = vector.load %arg19[%c0_74, %c0_75, %c0_76] : memref<1x64x32xbf16, #tpu.memory_space<vmem>>, vector<1x64x32xbf16>
    %126 = vector.shape_cast %125 : vector<1x64x32xbf16> to vector<64x32xbf16>
    %127 = arith.truncf %124 : vector<32x48xf32> to vector<32x48xbf16>
    %cst_77 = arith.constant dense<0.000000e+00> : vector<64x48xf32>
    %128 = tpu.matmul %126, %127, %cst_77 {dimension_numbers = #tpu.dot_dimension_numbers<[1], [0], [0], [1], [0, 0, 1, 1], [], []>} : vector<64x32xbf16>, vector<32x48xbf16>, vector<64x48xf32> -> vector<64x48xf32>
    %c0_78 = arith.constant 0 : index
    %c0_79 = arith.constant 0 : index
    %c0_80 = arith.constant 0 : index
    %129 = vector.load %arg20[%c0_78, %c0_79, %c0_80] : memref<1x64x1xf32, #tpu.memory_space<vmem>>, vector<1x64x1xf32>
    %130 = vector.shape_cast %129 : vector<1x64x1xf32> to vector<64x1xf32>
    %131 = vector.broadcast %130 : vector<64x1xf32> to vector<64x48xf32>
    %132 = arith.addf %128, %131 : vector<64x48xf32>
    %133 = vector.extract_strided_slice %132 {offsets = [0, 0], sizes = [32, 48], strides = [1, 1]} : vector<64x48xf32> to vector<32x48xf32>
    %134 = vector.extract_strided_slice %132 {offsets = [32, 0], sizes = [32, 48], strides = [1, 1]} : vector<64x48xf32> to vector<32x48xf32>
    %c0_81 = arith.constant 0 : index
    %c0_82 = arith.constant 0 : index
    %c0_83 = arith.constant 0 : index
    %135 = vector.load %arg21[%c0_81, %c0_82, %c0_83] : memref<1x32x32xbf16, #tpu.memory_space<vmem>>, vector<1x32x32xbf16>
    %136 = vector.shape_cast %135 : vector<1x32x32xbf16> to vector<32x32xbf16>
    %137 = arith.truncf %73 : vector<32x48xf32> to vector<32x48xbf16>
    %cst_84 = arith.constant dense<0.000000e+00> : vector<32x48xf32>
    %138 = tpu.matmul %136, %137, %cst_84 {dimension_numbers = #tpu.dot_dimension_numbers<[1], [0], [0], [1], [0, 0, 1, 1], [], []>} : vector<32x32xbf16>, vector<32x48xbf16>, vector<32x48xf32> -> vector<32x48xf32>
    %c0_85 = arith.constant 0 : index
    %c0_86 = arith.constant 0 : index
    %c0_87 = arith.constant 0 : index
    %139 = vector.load %arg22[%c0_85, %c0_86, %c0_87] : memref<1x32x1xf32, #tpu.memory_space<vmem>>, vector<1x32x1xf32>
    %140 = vector.shape_cast %139 : vector<1x32x1xf32> to vector<32x1xf32>
    %141 = vector.broadcast %140 : vector<32x1xf32> to vector<32x48xf32>
    %142 = arith.addf %138, %141 : vector<32x48xf32>
    %143 = arith.mulf %142, %133 : vector<32x48xf32>
    %cst_88 = arith.constant dense<0.000000e+00> : vector<48xf32>
    %144 = vector.multi_reduction <add>, %143, %cst_88 [0] : vector<32x48xf32> to vector<48xf32>
    %145 = vector.shape_cast %144 : vector<48xf32> to vector<1x48xf32>
    %cst_89 = arith.constant dense<0xFF800000> : vector<1xf32>
    %146 = vector.multi_reduction <maximumf>, %145, %cst_89 [1] : vector<1x48xf32> to vector<1xf32>
    %147 = vector.shape_cast %146 : vector<1xf32> to vector<1x1xf32>
    %148 = vector.broadcast %147 : vector<1x1xf32> to vector<1x48xf32>
    %149 = arith.subf %145, %148 : vector<1x48xf32>
    %150 = math.exp %149 : vector<1x48xf32>
    %cst_90 = arith.constant dense<0.000000e+00> : vector<1xf32>
    %151 = vector.multi_reduction <add>, %150, %cst_90 [1] : vector<1x48xf32> to vector<1xf32>
    %152 = vector.shape_cast %151 : vector<1xf32> to vector<1x1xf32>
    %153 = tpu.reciprocal %152 {approx = true} : vector<1x1xf32> -> vector<1x1xf32>
    %154 = vector.broadcast %153 : vector<1x1xf32> to vector<1x48xf32>
    %155 = arith.mulf %150, %154 : vector<1x48xf32>
    %156 = vector.broadcast %155 : vector<1x48xf32> to vector<32x48xf32>
    %157 = arith.mulf %134, %156 : vector<32x48xf32>
    %158 = arith.truncf %157 : vector<32x48xf32> to vector<32x48xbf16>
    %cst_91 = arith.constant dense<0.000000e+00> : vector<32x128xf32>
    %159 = tpu.matmul %158, %53, %cst_91 {dimension_numbers = #tpu.dot_dimension_numbers<[1], [0], [0], [1], [0, 0, 1, 1], [], []>} : vector<32x48xbf16>, vector<48x128xbf16>, vector<32x128xf32> -> vector<32x128xf32>
    %c0_92 = arith.constant 0 : index
    %c0_93 = arith.constant 0 : index
    %160 = vector.load %arg24[%c0_92, %c0_93] : memref<32x128xf32, #tpu.memory_space<vmem>>, vector<32x128xf32>
    tpu.vector_store %arg24[%c0_92, %c0_93], %90 {strides = array<i32>} : memref<32x128xf32, #tpu.memory_space<vmem>>, vector<32x128xf32>,
    %161 = arith.addf %107, %159 : vector<32x128xf32>
    %c0_94 = arith.constant 0 : index
    %c0_95 = arith.constant 0 : index
    %162 = vector.load %arg25[%c0_94, %c0_95] : memref<32x128xf32, #tpu.memory_space<vmem>>, vector<32x128xf32>
    tpu.vector_store %arg25[%c0_94, %c0_95], %161 {strides = array<i32>} : memref<32x128xf32, #tpu.memory_space<vmem>>, vector<32x128xf32>,
    return
  }
  func.func @transform_0(%arg0: i32) -> (i32, i32) {
    %c0_i32 = arith.constant 0 : i32
    %c0_i32_0 = arith.constant 0 : i32
    %c0_i32_1 = arith.constant 0 : i32
    return %c0_i32, %c0_i32_0 : i32, i32
  }
  func.func @transform_1(%arg0: i32) -> (i32, i32) {
    %c0_i32 = arith.constant 0 : i32
    %c0_i32_0 = arith.constant 0 : i32
    %c0_i32_1 = arith.constant 0 : i32
    return %c0_i32, %c0_i32_0 : i32, i32
  }
  func.func @transform_2(%arg0: i32) -> (i32, i32) {
    %c0_i32 = arith.constant 0 : i32
    %c0_i32_0 = arith.constant 0 : i32
    %c0_i32_1 = arith.constant 0 : i32
    return %c0_i32, %c0_i32_0 : i32, i32
  }
  func.func @transform_3(%arg0: i32) -> (i32, i32) {
    %c0_i32 = arith.constant 0 : i32
    %c0_i32_0 = arith.constant 0 : i32
    %c0_i32_1 = arith.constant 0 : i32
    return %c0_i32, %c0_i32_0 : i32, i32
  }
  func.func @transform_4(%arg0: i32) -> (i32, i32) {
    %c0_i32 = arith.constant 0 : i32
    %c0_i32_0 = arith.constant 0 : i32
    %c0_i32_1 = arith.constant 0 : i32
    return %c0_i32, %c0_i32_0 : i32, i32
  }
  func.func @transform_5(%arg0: i32) -> (i32, i32) {
    %c0_i32 = arith.constant 0 : i32
    %c0_i32_0 = arith.constant 0 : i32
    %c0_i32_1 = arith.constant 0 : i32
    return %c0_i32, %c0_i32_0 : i32, i32
  }
  func.func @transform_6(%arg0: i32) -> (i32, i32) {
    %c0_i32 = arith.constant 0 : i32
    %c0_i32_0 = arith.constant 0 : i32
    %c0_i32_1 = arith.constant 0 : i32
    return %c0_i32, %c0_i32_0 : i32, i32
  }
  func.func @transform_7(%arg0: i32) -> (i32, i32) {
    %c0_i32 = arith.constant 0 : i32
    %c0_i32_0 = arith.constant 0 : i32
    %c0_i32_1 = arith.constant 0 : i32
    return %c0_i32, %c0_i32_0 : i32, i32
  }
  func.func @transform_8(%arg0: i32) -> (i32, i32) {
    %c0_i32 = arith.constant 0 : i32
    %c0_i32_0 = arith.constant 0 : i32
    %c0_i32_1 = arith.constant 0 : i32
    return %c0_i32, %c0_i32_0 : i32, i32
  }
  func.func @transform_9(%arg0: i32) -> (i32, i32, i32) {
    %c0_i32 = arith.constant 0 : i32
    %c0_i32_0 = arith.constant 0 : i32
    %c0_i32_1 = arith.constant 0 : i32
    return %arg0, %c0_i32, %c0_i32_0 : i32, i32, i32
  }
  func.func @transform_10(%arg0: i32) -> (i32, i32, i32) {
    %c0_i32 = arith.constant 0 : i32
    %c0_i32_0 = arith.constant 0 : i32
    %c0_i32_1 = arith.constant 0 : i32
    return %arg0, %c0_i32, %c0_i32_0 : i32, i32, i32
  }
  func.func @transform_11(%arg0: i32) -> (i32, i32, i32) {
    %c0_i32 = arith.constant 0 : i32
    %c0_i32_0 = arith.constant 0 : i32
    %c0_i32_1 = arith.constant 0 : i32
    return %arg0, %c0_i32, %c0_i32_0 : i32, i32, i32
  }
  func.func @transform_12(%arg0: i32) -> (i32, i32, i32) {
    %c0_i32 = arith.constant 0 : i32
    %c0_i32_0 = arith.constant 0 : i32
    %c0_i32_1 = arith.constant 0 : i32
    return %arg0, %c0_i32, %c0_i32_0 : i32, i32, i32
  }
  func.func @transform_13(%arg0: i32) -> (i32, i32, i32) {
    %c0_i32 = arith.constant 0 : i32
    %c0_i32_0 = arith.constant 0 : i32
    %c0_i32_1 = arith.constant 0 : i32
    return %arg0, %c0_i32, %c0_i32_0 : i32, i32, i32
  }
  func.func @transform_14(%arg0: i32) -> (i32, i32, i32) {
    %c0_i32 = arith.constant 0 : i32
    %c0_i32_0 = arith.constant 0 : i32
    %c0_i32_1 = arith.constant 0 : i32
    return %arg0, %c0_i32, %c0_i32_0 : i32, i32, i32
  }
  func.func @transform_15(%arg0: i32) -> (i32, i32, i32) {
    %c0_i32 = arith.constant 0 : i32
    %c0_i32_0 = arith.constant 0 : i32
    %c0_i32_1 = arith.constant 0 : i32
    return %arg0, %c0_i32, %c0_i32_0 : i32, i32, i32
  }
  func.func @transform_16(%arg0: i32) -> (i32, i32, i32) {
    %c0_i32 = arith.constant 0 : i32
    %c0_i32_0 = arith.constant 0 : i32
    %c0_i32_1 = arith.constant 0 : i32
    return %arg0, %c0_i32, %c0_i32_0 : i32, i32, i32
  }
  func.func @transform_17(%arg0: i32) -> (i32, i32, i32) {
    %c0_i32 = arith.constant 0 : i32
    %c0_i32_0 = arith.constant 0 : i32
    %c0_i32_1 = arith.constant 0 : i32
    return %arg0, %c0_i32, %c0_i32_0 : i32, i32, i32
  }
  func.func @transform_18(%arg0: i32) -> (i32, i32, i32) {
    %c0_i32 = arith.constant 0 : i32
    %c0_i32_0 = arith.constant 0 : i32
    %c0_i32_1 = arith.constant 0 : i32
    return %arg0, %c0_i32, %c0_i32_0 : i32, i32, i32
  }
  func.func @transform_19(%arg0: i32) -> (i32, i32, i32) {
    %c0_i32 = arith.constant 0 : i32
    %c0_i32_0 = arith.constant 0 : i32
    %c0_i32_1 = arith.constant 0 : i32
    return %arg0, %c0_i32, %c0_i32_0 : i32, i32, i32
  }
  func.func @transform_20(%arg0: i32) -> (i32, i32, i32) {
    %c0_i32 = arith.constant 0 : i32
    %c0_i32_0 = arith.constant 0 : i32
    %c0_i32_1 = arith.constant 0 : i32
    return %arg0, %c0_i32, %c0_i32_0 : i32, i32, i32
  }
  func.func @transform_21(%arg0: i32) -> (i32, i32, i32) {
    %c0_i32 = arith.constant 0 : i32
    %c0_i32_0 = arith.constant 0 : i32
    %c0_i32_1 = arith.constant 0 : i32
    return %arg0, %c0_i32, %c0_i32_0 : i32, i32, i32
  }
  func.func @transform_22(%arg0: i32) -> (i32, i32) {
    %c0_i32 = arith.constant 0 : i32
    %c0_i32_0 = arith.constant 0 : i32
    %c0_i32_1 = arith.constant 0 : i32
    return %c0_i32, %c0_i32_0 : i32, i32
  }
  func.func @transform_23(%arg0: i32) -> (i32, i32) {
    %c0_i32 = arith.constant 0 : i32
    %c0_i32_0 = arith.constant 0 : i32
    %c0_i32_1 = arith.constant 0 : i32
    return %c0_i32, %c0_i32_0 : i32, i32
  }
  func.func @transform_24(%arg0: i32) -> (i32, i32) {
    %c0_i32 = arith.constant 0 : i32
    %c0_i32_0 = arith.constant 0 : i32
    %c0_i32_1 = arith.constant 0 : i32
    return %c0_i32, %c0_i32_0 : i32, i32
  }
}

</mosaic_0001>

<bundles_post_ra>
// kernel: tpu_custom_call.1
= control target key start
LH: loop header
LB: loop body
LE: loop exit
PB: predicated region body
PF: predicated region fallthrough
CT: control target
= control target key end

     0   :  { %s4624_s0 = inlined_call_operand.vmem [shape: f32[32,128], index: 0, kind: input, shape index: {}]   ;;  %s4625_s1 = inlined_call_operand.vmem [shape: f32[32,128], index: 1, kind: input, shape index: {}]   ;;  %s4626_s2 = inlined_call_operand.vmem [shape: f32[32,128], index: 2, kind: input, shape index: {}]   ;;  %s4627_s3 = inlined_call_operand.vmem [shape: s32[1,40], index: 3, kind: input, shape index: {}]   ;;  %s4628_s4 = inlined_call_operand.vmem [shape: s32[1,40], index: 4, kind: input, shape index: {}]   ;;  %s4629_s5 = inlined_call_operand.vmem [shape: s32[40,1], index: 5, kind: input, shape index: {}]   ;;  %s4630_s6 = inlined_call_operand.vmem [shape: s32[1,48], index: 6, kind: input, shape index: {}]   ;;  %s4631_s7 = inlined_call_operand.vmem [shape: s32[1,48], index: 7, kind: input, shape index: {}]   ;;  %s4632_s8 = inlined_call_operand.vmem [shape: s32[48,1], index: 8, kind: input, shape index: {}]   ;;  %s4633_s9 = inlined_call_operand.vmem [shape: bf16[2,32,32], index: 9, kind: input, shape index: {}]   ;;  %s4634_s10 = inlined_call_operand.vmem [shape: bf16[2,32,32], index: 10, kind: input, shape index: {}]   ;;  %s4635_s11 = inlined_call_operand.vmem [shape: f32[2,32,1], index: 11, kind: input, shape index: {}]   ;;  %s4636_s12 = inlined_call_operand.vmem [shape: bf16[2,32,32], index: 12, kind: input, shape index: {}]   ;;  %s4637_s13 = inlined_call_operand.vmem [shape: bf16[2,32,32], index: 13, kind: input, shape index: {}]   ;;  %s4638_s14 = inlined_call_operand.vmem [shape: f32[2,32,1], index: 14, kind: input, shape index: {}]   ;;  %s4639_s15 = inlined_call_operand.vmem [shape: bf16[2,32,32], index: 15, kind: input, shape index: {}]   ;;  %s4640_s16 = inlined_call_operand.vmem [shape: bf16[2,32,32], index: 16, kind: input, shape index: {}]   ;;  %s4641_s17 = inlined_call_operand.vmem [shape: f32[2,32,1], index: 17, kind: input, shape index: {}]   ;;  %s4642_s18 = inlined_call_operand.vmem [shape: bf16[2,64,32], index: 18, kind: input, shape index: {}]   ;;  %s4643_s19 = inlined_call_operand.vmem [shape: f32[2,64,1], index: 19, kind: input, shape index: {}]   ;;  %s4644_s20 = inlined_call_operand.vmem [shape: bf16[2,32,32], index: 20, kind: input, shape index: {}]   ;;  %s4645_s21 = inlined_call_operand.vmem [shape: f32[2,32,1], index: 21, kind: input, shape index: {}]   ;;  %s4646_s22 = inlined_call_operand.hbm [shape: f32[32,128], index: 22, kind: output, shape index: {0}]   ;;  %s4647_s23 = inlined_call_operand.hbm [shape: f32[32,128], index: 23, kind: output, shape index: {1}]   ;;  %s4648_s24 = inlined_call_operand.hbm [shape: f32[32,128], index: 24, kind: output, shape index: {2}]  }
   0x1   :  { %4673 = sst [smem:[#allocation10_spill]] %s4624_s0 }
   0x2   :  { %4674 = sst [smem:[#allocation11_spill]] %s4625_s1 }
   0x3   :  { %4675 = sst [smem:[#allocation12_spill]] %s4626_s2 }
   0x4   :  { %4676 = sst [smem:[#allocation13_spill]] %s4627_s3 }
   0x5   :  { %4677 = sst [smem:[#allocation14_spill]] %s4628_s4 }
   0x6   :  { %4678 = sst [smem:[#allocation15_spill]] %s4629_s5 }
   0x7   :  { %4679 = sst [smem:[#allocation16_spill]] %s4630_s6 }
   0x8   :  { %4680 = sst [smem:[#allocation17_spill]] %s4631_s7 }
   0x9   :  { %4681 = sst [smem:[#allocation18_spill]] %s4632_s8 }
   0xa   :  { %4682 = sst [smem:[#allocation19_spill]] %s4633_s9 }
   0xb   :  { %4683 = sst [smem:[#allocation20_spill]] %s4634_s10 }
   0xc   :  { %4684 = sst [smem:[#allocation21_spill]] %s4635_s11 }
   0xd   :  { %4685 = sst [smem:[#allocation22_spill]] %s4636_s12 }
   0xe   :  { %4686 = sst [smem:[#allocation23_spill]] %s4637_s13 }
   0xf   :  { %4687 = sst [smem:[#allocation24_spill]] %s4638_s14 }
  0x10   :  { %4688 = sst [smem:[#allocation25_spill]] %s4639_s15 }
  0x11   :  { %4689 = sst [smem:[#allocation26_spill]] %s4640_s16 }
  0x12   :  { %4690 = sst [smem:[#allocation27_spill]] %s4641_s17 }
  0x13   :  { %4691 = sst [smem:[#allocation28_spill]] %s4646_s22 }
  0x14   :  { %4692 = sst [smem:[#allocation29_spill]] %s4647_s23 }
  0x15   :  { %4693 = sst [smem:[#allocation30_spill]] %s4648_s24 }
  0x16   :  { %30 = vsyncpa [#allocation3], 0 }
  0x17   :  { %31 = vsyncpa [#allocation5], 0  ;;  %s3664_s5 = smov 0  }
  0x18 LB: > { %4694 = sst [smem:[#allocation9_spill]] %s3529_s5  ;;  %s3670_s26 = sadd.s32 4294967295, %s3529_s5   ;;  %s3529_s5 = sphi %s3664_s5, %s37_s5  }
  0x19   : > { %p2844_p0 = scmp.ge.s32.totalorder %s3529_s5, 1  ;;  %p774_p1 = scmp.lt.s32.totalorder %s3529_s5, 3 }
  0x1b   : > { %p775_p2 = pnand %p2844_p0, %p774_p1 }
  0x1c   : > { %p895_p3 = scmp.lt.s32.totalorder (!%p775_p2), %s3670_s26, 1  ;;  %s4695_s9 = sld [smem:[#allocation19_spill]] (!%p775_p2) }
  0x1d   : > { %778 = sbr.rel (%p775_p2) target bundleno = 1844 (0x734), region = 108  ;;  %s4696_s10 = sld [smem:[#allocation20_spill]] (!%p775_p2) }
  0x1e   : > { %s4697_s11 = sld [smem:[#allocation21_spill]] (!%p775_p2)  ;;  %s4698_s12 = sld [smem:[#allocation22_spill]] (!%p775_p2) }
  0x1f   : > { %s4699_s13 = sld [smem:[#allocation23_spill]] (!%p775_p2)  ;;  %s4700_s14 = sld [smem:[#allocation24_spill]] (!%p775_p2) }
  0x20   : > { %s4701_s15 = sld [smem:[#allocation25_spill]] (!%p775_p2)  ;;  %s4702_s16 = sld [smem:[#allocation26_spill]] (!%p775_p2) }
  0x21   : > { %s4703_s17 = sld [smem:[#allocation27_spill]] (!%p775_p2)  ;;  %p2871_p4 = scmp.ne.s32.totalorder (!%p775_p2), %s3670_s26, 0 }
  0x24   : > { %s896_s27 = scalar_select %p895_p3, %s3670_s26, 1 }
  0x25   : > { %s4704_s23 = sld [smem:[#allocation10_spill]] (!%p2871_p4) }
  0x26   : > { %s3028_s28 = sshll.u32 %s896_s27, 4  ;;  %s3030_s6 = sshll.u32 %s896_s27, 5 }
  0x27   : > { %s3679_s0 = scalar_lea.vmem %s4695_s9, %s3028_s28  ;;  %s3684_s3 = scalar_lea.vmem %s4696_s10, %s3028_s28 }
  0x28   : > { %s3689_s4 = scalar_lea.vmem %s4697_s11, %s3030_s6  ;;  %s3694_s24 = scalar_lea.vmem %s4698_s12, %s3028_s28 }
  0x29   : > { %s3699_s2 = scalar_lea.vmem %s4699_s13, %s3028_s28  ;;  %s3704_s7 = scalar_lea.vmem %s4700_s14, %s3030_s6 }
  0x2a   : > { %s3709_s25 = scalar_lea.vmem %s4701_s15, %s3028_s28  ;;  %s3714_s5 = scalar_lea.vmem %s4702_s16, %s3028_s28 }
  0x2b   : > { %s3719_s22 = scalar_lea.vmem %s4703_s17, %s3030_s6  ;;  %s3724_s9 = scalar_lea.vmem %s4642_s18, %s3030_s6  ;;  %v965_v0 = vld [vmem:[%s4704_s23] sm:$0xff] (!%p2871_p4)  ;;  %v966_v1 = vld [vmem:[%s4704_s23 + $0x8] sm:$0xff] (!%p2871_p4)  ;;  %v967_v2 = vld [vmem:[%s4704_s23 + $0x10] sm:$0xff] (!%p2871_p4) }
  0x2c   : > { %s3038_s29 = sshll.u32 %s896_s27, 6  ;;  %s3729_s30 = scalar_lea.vmem %s4644_s20, %s3028_s28  ;;  %969 = vst [vmem:[#allocation2] sm:$0xff] (!%p2871_p4), %v965_v0  ;;  %970 = vst [vmem:[#allocation2 + $0x8] sm:$0xff] (!%p2871_p4), %v966_v1  ;;  %v968_v3 = vld [vmem:[%s4704_s23 + $0x18] sm:$0xff] (!%p2871_p4) }
  0x2d   : > { %s3734_s8 = scalar_lea.vmem %s4643_s19, %s3038_s29  ;;  %s3739_s1 = scalar_lea.vmem %s4645_s21, %s3030_s6  ;;  %971 = vst [vmem:[#allocation2 + $0x10] sm:$0xff] (!%p2871_p4), %v967_v2  ;;  %972 = vst [vmem:[#allocation2 + $0x18] sm:$0xff] (!%p2871_p4), %v968_v3 }
  0x2e   : > { %964 = sbr.rel (%p2871_p4) target bundleno = 57 (0x39), region = 112  ;;  %s4705_s12 = sld [smem:[#allocation11_spill]] (!%p2871_p4) }
  0x2f   : > { %s4706_s17 = sld [smem:[#allocation12_spill]] (!%p2871_p4) }
  0x34   : > { %v973_v4 = vld [vmem:[%s4705_s12] sm:$0xff] (!%p2871_p4)  ;;  %v974_v5 = vld [vmem:[%s4705_s12 + $0x8] sm:$0xff] (!%p2871_p4)  ;;  %v975_v6 = vld [vmem:[%s4705_s12 + $0x10] sm:$0xff] (!%p2871_p4) }
  0x35   : > { %977 = vst [vmem:[#allocation4] sm:$0xff] %v973_v4  ;;  %978 = vst [vmem:[#allocation4 + $0x8] sm:$0xff] %v974_v5  ;;  %v976_v7 = vld [vmem:[%s4705_s12 + $0x18] sm:$0xff]  ;;  %v981_v8 = vld [vmem:[%s4706_s17] sm:$0xff] }
  0x36   : > { %979 = vst [vmem:[#allocation4 + $0x10] sm:$0xff] %v975_v6  ;;  %980 = vst [vmem:[#allocation4 + $0x18] sm:$0xff] %v976_v7  ;;  %v982_v9 = vld [vmem:[%s4706_s17 + $0x8] sm:$0xff]  ;;  %v983_v10 = vld [vmem:[%s4706_s17 + $0x10] sm:$0xff] }
  0x37   : > { %985 = vst [vmem:[#allocation6] sm:$0xff] %v981_v8  ;;  %v984_v11 = vld [vmem:[%s4706_s17 + $0x18] sm:$0xff]  ;;  %986 = vst [vmem:[#allocation6 + $0x8] sm:$0xff] %v982_v9 }
  0x38   : > { %987 = vst [vmem:[#allocation6 + $0x10] sm:$0xff] %v983_v10  ;;  %988 = vst [vmem:[#allocation6 + $0x18] sm:$0xff] %v984_v11 }
  0x39 PF: > { %v1002_v12 = vlaneseq  ;;  %v989_v13 = vld [vmem:[#allocation2] sm:$0xff]  ;;  %v990_v14 = vld [vmem:[#allocation2 + $0x8] sm:$0xff]  ;;  %s4707_s16 = sld [smem:[#allocation13_spill]]  ;;  %v3531_v20 = vmov 0   ;;  %s4708_s11 = sld [smem:[#allocation15_spill]]  ;;  %v2118_v62 = vld [vmem:[%s3719_s22 + $0x18] sm:$0xff] }
  0x3a   : > { %v1308_v16 = vpack.c.bf16 %v990_v14, %v989_v13  ;;  %3409 = vset.pattern.permute.xlu0 %v3531_v20  ;;  %3410 = vset.pattern.permute.xlu1 %v3531_v20  ;;  %v3532_v31 = vmov 1.0|1.0   ;;  %s4713_s27 = sld [smem:[#allocation14_spill]]  ;;  %s4714_s10 = sld [smem:[#allocation18_spill]]  ;;  %v2116_v57 = vld [vmem:[%s3719_s22 + $0x8] sm:$0xff]  ;;  %v2115_v59 = vld [vmem:[%s3719_s22] sm:$0xff] }
  0x3b   : > { %v3784_v17 = vshrl.u32 %v1002_v12, 7  ;;  %s4729_s13 = sld [smem:[#allocation16_spill]]  ;;  %v2117_v63 = vld [vmem:[%s3719_s22 + $0x10] sm:$0xff]  ;;  %v992_v3 = vld [vmem:[#allocation2 + $0x18] sm:$0xff]  ;;  %v2262_v5 = vld [vmem:[%s3734_s8 + $0x8] sm:$0xff]  ;;  %v4750_v36 = vmov 0 }
  0x3c   : > { %3161 = vmatprep.mubr.bf16.mxu0 %v1308_v16  ;;  %v991_v2 = vld [vmem:[#allocation2 + $0x10] sm:$0xff]  ;;  %v2261_v6 = vld [vmem:[%s3734_s8] sm:$0xff]  ;;  %v2413_v11 = vld [vmem:[%s3739_s1 + $0x8] sm:$0xff]  ;;  %v4756_v54 = vmov 0  ;;  %v4758_v58 = vmov 0  ;;  %p3387_p5 = scmp.eq.s32.totalorder %s3670_s26, 1 }
  0x3d   : > { %v3792_v23 = vadd.s32 8, %v3784_v17  ;;  %v3797_v24 = vadd.s32 16, %v3784_v17  ;;  %v3800_v25 = vadd.s32 24, %v3784_v17  ;;  %v3806_v27 = vadd.s32 32, %v3784_v17  ;;  %v2412_v13 = vld [vmem:[%s3739_s1] sm:$0xff]  ;;  %v2414_v16 = vld [vmem:[%s3739_s1 + $0x10] sm:$0xff] }
  0x3e   : > { %v3809_v28 = vadd.s32 40, %v3784_v17  ;;  %v3834_v33 = vadd.s32 48, %v3784_v17  ;;  %v3837_v34 = vadd.s32 56, %v3784_v17  ;;  %v3851_v37 = vadd.s32 64, %v3784_v17  ;;  %v996_v20 = vld [vmem:[#allocation4 + $0x18] sm:$0xff]  ;;  %v3415_v7 = vld [vmem:[%s3684_s3] sm:$0xff]  }
  0x3f   : > { %v3781_v15 = vld [vmem:[%s4707_s16] ss:$0 sm:$0xff]  ;;  %v1110_v26 = vld [vmem:[%s4708_s11 + $0x10] sm:$0xff]  ;;  %v1109_v29 = vld [vmem:[%s4708_s11 + $0x8] sm:$0xff]  ;;  %v3854_v38 = vadd.s32 72, %v3784_v17  ;;  %v3893_v44 = vadd.s32 80, %v3784_v17  ;;  %v1309_v8 = vpack.c.bf16 %v992_v3, %v991_v2 }
  0x40   : > { %v993_v18 = vld [vmem:[#allocation4] sm:$0xff]  ;;  %v994_v19 = vld [vmem:[#allocation4 + $0x8] sm:$0xff]  ;;  %vm1023_vm0 = vcmp.eq.s32.totalorder %v3784_v17, %v3781_v15  ;;  %1122 = vperm.xlu1 %3410, %v1110_v26   ;;  %vm1024_vm1 = vcmp.eq.s32.totalorder %v3792_v23, %v3781_v15  ;;  %vm1025_vm2 = vcmp.eq.s32.totalorder %v3797_v24, %v3781_v15  ;;  %vm1026_vm3 = vcmp.eq.s32.totalorder %v3800_v25, %v3781_v15  ;;  %v1111_v30 = vld [vmem:[%s4708_s11 + $0x18] sm:$0xff] }
  0x41   : > { %v3786_v21 = vpack.c.bf16 %v994_v19, %v993_v18  ;;  %v1108_v22 = vld [vmem:[%s4708_s11] sm:$0xff]  ;;  %vm2876_vm4 = vmpackc.low %vm1024_vm1, %vm1023_vm0  ;;  %vm1027_vm6 = vcmp.eq.s32.totalorder %v3806_v27, %v3781_v15  ;;  %vm1028_vm7 = vcmp.eq.s32.totalorder %v3809_v28, %v3781_v15  ;;  %vm1029_vm9 = vcmp.eq.s32.totalorder %v3834_v33, %v3781_v15  ;;  %v1234_v41 = vld [vmem:[%s4714_s10 + $0x8] sm:$0xff] }
  0x42   : > { %1116 = vperm.xlu0 %3409, %v1108_v22   ;;  %3145 = vmatprep.subr.msk.bf16.mxu0 %vm2876_vm4, %v3532_v31  ;;  %vm3825_vm5 = vmpackc.low %vm1026_vm3, %vm1025_vm2  ;;  %v1112_v35 = vld [vmem:[%s4708_s11 + $0x20] sm:$0xff]  ;;  %vm1030_vm10 = vcmp.eq.s32.totalorder %v3837_v34, %v3781_v15  ;;  %vm1031_vm14 = vcmp.eq.s32.totalorder %v3851_v37, %v3781_v15  ;;  %vm1032_vm15 = vcmp.eq.s32.totalorder %v3854_v38, %v3781_v15  ;;  %v1236_v43 = vld [vmem:[%s4714_s10 + $0x18] sm:$0xff]  ;;  %v3896_v45 = vadd.s32 88, %v3784_v17 }
  0x43   : > { %3181 = vmatprep.mubr.bf16.mxu1 %v3786_v21  ;;  %3146 = vmatpush3.bf16.msk.msra.mxu0 %vm2876_vm4, %v3532_v31  ;;  %vm3846_vm8 = vmpackc.low %vm1028_vm7, %vm1027_vm6  ;;  %v3859_v39 = vld [vmem:[%s4713_s27] ss:$0 sm:$0xff]  ;;  %v1235_v46 = vld [vmem:[%s4714_s10 + $0x10] sm:$0xff]  ;;  %vm1033_vm7 = vcmp.eq.s32.totalorder %v3893_v44, %v3781_v15  ;;  %v3933_v50 = vadd.s32 96, %v3784_v17  ;;  %v3936_v51 = vadd.s32 104, %v3784_v17  ;;  %v3963_v55 = vadd.s32 112, %v3784_v17 }
  0x44   : > { %1125 = vperm.xlu1 %3410, %v1111_v30   ;;  %3147 = vmatprep.subr.msk.bf16.mxu0 %vm3825_vm5, %v3532_v31  ;;  %v1233_v40 = vld [vmem:[%s4714_s10] sm:$0xff]  ;;  %vm1068_vm11 = vcmp.eq.s32.totalorder %v3784_v17, %v3859_v39  ;;  %vm1069_vm12 = vcmp.eq.s32.totalorder %v3792_v23, %v3859_v39  ;;  %vm3881_vm13 = vmpackc.low %vm1030_vm10, %vm1029_vm9  ;;  %vm1070_vm0 = vcmp.eq.s32.totalorder %v3797_v24, %v3859_v39  ;;  %v1238_v49 = vld [vmem:[%s4714_s10 + $0x28] sm:$0xff]  ;;  %v3966_v56 = vadd.s32 120, %v3784_v17  ;;  %s4762_s27 = sld [smem:[#allocation17_spill]] }
  0x45   : > { %vm1071_vm1 = vcmp.eq.s32.totalorder %v3800_v25, %v3859_v39  ;;  %vm2892_vm2 = vmpackc.low %vm1069_vm12, %vm1068_vm11  ;;  %vm1072_vm4 = vcmp.eq.s32.totalorder %v3806_v27, %v3859_v39  ;;  %vm1074_vm10 = vcmp.eq.s32.totalorder %v3834_v33, %v3859_v39  ;;  %vm1075_vm11 = vcmp.eq.s32.totalorder %v3837_v34, %v3859_v39  ;;  %v1237_v53 = vld [vmem:[%s4714_s10 + $0x20] sm:$0xff]  ;;  %v2263_v18 = vld [vmem:[%s3734_s8 + $0x10] sm:$0xff] }
  0x46   : > { %1119 = vperm.xlu0 %3409, %v1109_v29   ;;  %vm3911_vm3 = vmpackc.low %vm1032_vm15, %vm1031_vm14  ;;  %3165 = vmatprep.subr.msk.bf16.mxu1 %vm2892_vm2, %v3532_v31  ;;  %vm1036_vm14 = vcmp.eq.s32.totalorder %v3936_v51, %v3781_v15  ;;  %v4005_v61 = vld [vmem:[%s4729_s13] ss:$0 sm:$0xff]  ;;  %v995_v19 = vld [vmem:[#allocation4 + $0x10] sm:$0xff] }
  0x47   : > { %3148 = vmatpush3.bf16.msk.msra.mxu0 %vm3825_vm5, %v3532_v31  ;;  %vm1073_vm5 = vcmp.eq.s32.totalorder %v3809_v28, %v3859_v39  ;;  %3166 = vmatpush3.bf16.msk.msra.mxu1 %vm2892_vm2, %v3532_v31  ;;  %vm3921_vm6 = vmpackc.low %vm1071_vm1, %vm1070_vm0  ;;  %vm1076_vm0 = vcmp.eq.s32.totalorder %v3851_v37, %v3859_v39  ;;  %vm1077_vm1 = vcmp.eq.s32.totalorder %v3854_v38, %v3859_v39  ;;  %v2415_v29 = vld [vmem:[%s3739_s1 + $0x18] sm:$0xff]  ;;  %v3416_v10 = vld [vmem:[%s3684_s3 + $0x8] sm:$0xff]  }
  0x48   : > { %3149 = vmatprep.subr.msk.bf16.mxu0 %vm3846_vm8, %v3532_v31  ;;  %1240 = vperm.xlu1 %3410, %v1233_v40   ;;  %vm3944_vm9 = vmpackc.low %vm1073_vm5, %vm1072_vm4  ;;  %vm1038_vm4 = vcmp.eq.s32.totalorder %v3966_v56, %v3781_v15  ;;  %v4147_v26 = vpack.c.bf16 %v996_v20, %v995_v19  ;;  %v2264_v30 = vld [vmem:[%s3734_s8 + $0x18] sm:$0xff]  ;;  %v4754_v40 = vmov 0 }
  0x49   : > { %3167 = vmatprep.subr.msk.bf16.mxu1 %vm3921_vm6, %v3532_v31  ;;  %vm3982_vm15 = vmpackc.low %vm1075_vm11, %vm1074_vm10  ;;  %vm1149_vm10 = vcmp.eq.s32.totalorder %v3792_v23, %v4005_v61 }
  0x4a   : > { %1128 = vperm.xlu0 %3409, %v1112_v35   ;;  %vm4018_vm5 = vmpackc.low %vm1077_vm1, %vm1076_vm0  ;;  %vm1151_vm0 = vcmp.eq.s32.totalorder %v3800_v25, %v4005_v61  ;;  %v2265_v35 = vld [vmem:[%s3734_s8 + $0x20] sm:$0xff] }
  0x4b   : > { %3150 = vmatpush3.bf16.msk.msra.mxu0 %vm3846_vm8, %v3532_v31  ;;  %vm1034_vm8 = vcmp.eq.s32.totalorder %v3896_v45, %v3781_v15  ;;  %3168 = vmatpush3.bf16.msk.msra.mxu1 %vm3921_vm6, %v3532_v31 }
  0x4c   : > { %3151 = vmatprep.subr.msk.bf16.mxu0 %vm3881_vm13, %v3532_v31  ;;  %1246 = vperm.xlu1 %3410, %v1235_v46   ;;  %vm3958_vm12 = vmpackc.low %vm1034_vm8, %vm1033_vm7  ;;  %vm1078_vm7 = vcmp.eq.s32.totalorder %v3893_v44, %v3859_v39  ;;  %vm1079_vm8 = vcmp.eq.s32.totalorder %v3896_v45, %v3859_v39  ;;  %v3533_v46 = vmov 0.0  }
  0x4d   : > { %3169 = vmatprep.subr.msk.bf16.mxu1 %vm3944_vm9, %v3532_v31  ;;  %vm4046_vm11 = vmpackc.low %vm1079_vm8, %vm1078_vm7 }
  0x4e   : > { %1243 = vperm.xlu0 %3409, %v1234_v41   ;;  %v4216_v41 = vand.u32 127, %v1002_v12 }
  0x4f   : > { %3152 = vmatpush3.bf16.msk.msra.mxu0 %vm3881_vm13, %v3532_v31  ;;  %vm1035_vm13 = vcmp.eq.s32.totalorder %v3933_v50, %v3781_v15  ;;  %3170 = vmatpush3.bf16.msk.msra.mxu1 %vm3944_vm9, %v3532_v31  ;;  %vm1148_vm9 = vcmp.eq.s32.totalorder %v3784_v17, %v4005_v61 }
  0x50   : > { %3153 = vmatprep.subr.msk.bf16.mxu0 %vm3911_vm3, %v3532_v31  ;;  %1252 = vperm.xlu1 %3410, %v1237_v53   ;;  %vm3994_vm2 = vmpackc.low %vm1036_vm14, %vm1035_vm13  ;;  %vm1081_vm13 = vcmp.eq.s32.totalorder %v3936_v51, %v3859_v39 }
  0x51   : > { %3171 = vmatprep.subr.msk.bf16.mxu1 %vm3982_vm15, %v3532_v31  ;;  %vm4059_vm14 = vmpackc.low %vm1149_vm10, %vm1148_vm9  ;;  %vm1154_vm9 = vcmp.eq.s32.totalorder %v3834_v33, %v4005_v61  ;;  %vm1155_vm10 = vcmp.eq.s32.totalorder %v3837_v34, %v4005_v61 }
  0x52   : > { %1249 = vperm.xlu0 %3409, %v1236_v43  }
  0x53   : > { %3154 = vmatpush3.bf16.msk.msra.mxu0 %vm3911_vm3, %v3532_v31  ;;  %vm1037_vm3 = vcmp.eq.s32.totalorder %v3963_v55, %v3781_v15  ;;  %3172 = vmatpush3.bf16.msk.msra.mxu1 %vm3982_vm15, %v3532_v31  ;;  %vm1150_vm15 = vcmp.eq.s32.totalorder %v3797_v24, %v4005_v61  ;;  %v3417_v15 = vld [vmem:[%s3679_s0] sm:$0xff]  }
  0x54   : > { %3155 = vmatprep.subr.msk.bf16.mxu0 %vm3958_vm12, %v3532_v31  ;;  %2121 = vperm.xlu1 %3410, %v2115_v59   ;;  %vm4025_vm6 = vmpackc.low %vm1038_vm4, %vm1037_vm3  ;;  %vm1083_vm3 = vcmp.eq.s32.totalorder %v3966_v56, %v3859_v39 }
  0x55   : > { %3173 = vmatprep.subr.msk.bf16.mxu1 %vm4018_vm5, %v3532_v31  ;;  %vm4087_vm4 = vmpackc.low %vm1151_vm0, %vm1150_vm15  ;;  %vm1158_vm0 = vcmp.eq.s32.totalorder %v3893_v44, %v4005_v61 }
  0x56   : > { %1255 = vperm.xlu0 %3409, %v1238_v49  }
  0x57   : > { %3156 = vmatpush3.bf16.msk.msra.mxu0 %vm3958_vm12, %v3532_v31  ;;  %vm1080_vm12 = vcmp.eq.s32.totalorder %v3933_v50, %v3859_v39  ;;  %3174 = vmatpush3.bf16.msk.msra.mxu1 %vm4018_vm5, %v3532_v31  ;;  %vm1152_vm5 = vcmp.eq.s32.totalorder %v3806_v27, %v4005_v61 }
  0x58   : > { %3157 = vmatprep.subr.msk.bf16.mxu0 %vm3994_vm2, %v3532_v31  ;;  %2131 = vperm.xlu1 %3410, %v2117_v63   ;;  %vm4076_vm1 = vmpackc.low %vm1081_vm13, %vm1080_vm12  ;;  %vm1156_vm12 = vcmp.eq.s32.totalorder %v3851_v37, %v4005_v61  ;;  %vm1157_vm13 = vcmp.eq.s32.totalorder %v3854_v38, %v4005_v61 }
  0x59   : > { %3175 = vmatprep.subr.msk.bf16.mxu1 %vm4046_vm11, %v3532_v31  ;;  %vm4158_vm15 = vmpackc.low %vm1157_vm13, %vm1156_vm12 }
  0x5a   : > { %2126 = vperm.xlu0 %3409, %v2116_v57  }
  0x5b   : > { %3158 = vmatpush3.bf16.msk.msra.mxu0 %vm3994_vm2, %v3532_v31  ;;  %vm1082_vm2 = vcmp.eq.s32.totalorder %v3963_v55, %v3859_v39  ;;  %3176 = vmatpush3.bf16.msk.msra.mxu1 %vm4046_vm11, %v3532_v31  ;;  %vm4136_vm11 = vmpackc.low %vm1155_vm10, %vm1154_vm9  ;;  %v4752_v39 = vmov 0  ;;  %vm1163_vm9 = vcmp.eq.s32.totalorder %v3966_v56, %v4005_v61 }
  0x5c   : > { %3159 = vmatprep.subr.msk.bf16.mxu0 %vm4025_vm6, %v3532_v31  ;;  %2271 = vperm.xlu1 %3410, %v2261_v6   ;;  %vm4107_vm7 = vmpackc.low %vm1083_vm3, %vm1082_vm2  ;;  %vm1160_vm3 = vcmp.eq.s32.totalorder %v3933_v50, %v4005_v61 }
  0x5d   : > { %3177 = vmatprep.subr.msk.bf16.mxu1 %vm4076_vm1, %v3532_v31 }
  0x5e   : > { %2136 = vperm.xlu0 %3409, %v2118_v62  }
  0x5f   : > { %3160 = vmatpush3.bf16.msk.msra.mxu0 %vm4025_vm6, %v3532_v31  ;;  %vm1153_vm6 = vcmp.eq.s32.totalorder %v3809_v28, %v4005_v61  ;;  %3178 = vmatpush3.bf16.msk.msra.mxu1 %vm4076_vm1, %v3532_v31  ;;  %vm1159_vm1 = vcmp.eq.s32.totalorder %v3896_v45, %v4005_v61 }
  0x60   : > { %3185 = vmatprep.subr.msk.bf16.mxu0 %vm4059_vm14, %v3532_v31  ;;  %vm4114_vm8 = vmpackc.low %vm1153_vm6, %vm1152_vm5  ;;  %2418 = vperm.xlu1 %3410, %v2412_v13   ;;  %vm1161_vm5 = vcmp.eq.s32.totalorder %v3936_v51, %v4005_v61 }
  0x61   : > { %3179 = vmatprep.subr.msk.bf16.mxu1 %vm4107_vm7, %v3532_v31  ;;  %vm4173_vm2 = vmpackc.low %vm1159_vm1, %vm1158_vm0 }
  0x62   : > { %2276 = vperm.xlu0 %3409, %v2262_v5   ;;  %3162 = vmatmul.mubr.bf16.vlgmr.msra.gmra.mrb[0].mxu0 %v1309_v8  ;;  %v4751_v36 = vsel %vm4173_vm2, 4294967295, %v4750_v36  ;;  %vm4187_vm6 = vmpackc.low %vm1161_vm5, %vm1160_vm3 }
  0x63   : > { %3186 = vmatpush3.bf16.msk.msra.mxu0 %vm4059_vm14, %v3532_v31  ;;  %3201 = vmatprep.mubr.bf16.mxu0 %v3786_v21  ;;  %v4753_v39 = vsel %vm4187_vm6, 4294967295, %v4752_v39 }
  0x64   : > { %3187 = vmatprep.subr.msk.bf16.mxu0 %vm4087_vm4, %v3532_v31  ;;  %3180 = vmatpush3.bf16.msk.msra.mxu1 %vm4107_vm7, %v3532_v31  ;;  %vm1162_vm7 = vcmp.eq.s32.totalorder %v3963_v55, %v4005_v61 }
  0x65   : > { %2281 = vperm.xlu1 %3410, %v2263_v18   ;;  %vm4201_vm10 = vmpackc.low %vm1163_vm9, %vm1162_vm7  ;;  %vm4658_vm9 = vcmask 1043456  }
  0x66   : > { %2423 = vperm.xlu0 %3409, %v2413_v11   ;;  %v4755_v40 = vsel %vm4201_vm10, 4294967295, %v4754_v40 }
  0x67   : > { %3188 = vmatpush3.bf16.msk.msra.mxu0 %vm4087_vm4, %v3532_v31  ;;  %3182 = vmatmul.mubr.bf16.vlgmr.msra.gmra.mrb[0].mxu1 %v4147_v26 }
  0x68   : > { %3189 = vmatprep.subr.msk.bf16.mxu0 %vm4114_vm8, %v3532_v31 }
  0x69   : > { %2286 = vperm.xlu1 %3410, %v2264_v30  }
  0x6a   : > { %2428 = vperm.xlu0 %3409, %v2414_v16  }
  0x6b   : > { %3190 = vmatpush3.bf16.msk.msra.mxu0 %vm4114_vm8, %v3532_v31 }
  0x6c   : > { %3191 = vmatprep.subr.msk.bf16.mxu0 %vm4136_vm11, %v3532_v31 }
  0x6e   : > { %2433 = vperm.xlu0 %3409, %v2415_v29  }
  0x6f   : > { %3192 = vmatpush3.bf16.msk.msra.mxu0 %vm4136_vm11, %v3532_v31 }
  0x70   : > { %3193 = vmatprep.subr.msk.bf16.mxu0 %vm4158_vm15, %v3532_v31 }
  0x72   : > { %2291 = vperm.xlu0 %3409, %v2265_v35  }
  0x73   : > { %3194 = vmatpush3.bf16.msk.msra.mxu0 %vm4158_vm15, %v3532_v31 }
  0x74   : > { %3195 = vmatprep.subr.msk.bf16.mxu0 %vm4173_vm2, %v3532_v31 }
  0x77   : > { %3196 = vmatpush3.bf16.msk.msra.mxu0 %vm4173_vm2, %v3532_v31 }
  0x78   : > { %3197 = vmatprep.subr.msk.bf16.mxu0 %vm4187_vm6, %v3532_v31 }
  0x7b   : > { %3198 = vmatpush3.bf16.msk.msra.mxu0 %vm4187_vm6, %v3532_v31 }
  0x7c   : > { %3199 = vmatprep.subr.msk.bf16.mxu0 %vm4201_vm10, %v3532_v31 }
  0x7f   : > { %3200 = vmatpush3.bf16.msk.msra.mxu0 %vm4201_vm10, %v3532_v31 }
  0x82   : > { %3202 = vmatmul.mubr.bf16.vlgmr.msra.gmra.mrb[4].mxu0 %v4147_v26 }
  0xbf   : > { %v1123_v43 = vpop.permute.xlu1 %1122 }
  0xc0   : > { %vm1132_vm13 = vcmp.eq.s32.totalorder %v1123_v43, %v4216_v41  ;;  %v2875_v43 = vld [vmem:[%s4762_s27] ss:$0 sm:$0xff] }
  0xc1   : > { %v1117_v42 = vpop.permute.xlu0 %1116  ;;  %v1137_v48 = vsel %vm1132_vm13, 1.0, %v3533_v46  ;;  %vm1198_vm10 = vcmp.eq.s32.totalorder %v3809_v28, %v2875_v43  ;;  %vm1199_vm2 = vcmp.eq.s32.totalorder %v3834_v33, %v2875_v43 }
  0xc2   : > { %vm1130_vm12 = vcmp.eq.s32.totalorder %v1117_v42, %v4216_v41 }
  0xc3   : > { %v1135_v47 = vsel %vm1130_vm12, 1.0, %v3533_v46  ;;  %v1126_v52 = vpop.permute.xlu1 %1125 }
  0xc4   : > { %vm1133_vm3 = vcmp.eq.s32.totalorder %v1126_v52, %v4216_v41 }
  0xc5   : > { %v1120_v49 = vpop.permute.xlu0 %1119  ;;  %v1138_v57 = vsel %vm1133_vm3, 1.0, %v3533_v46  ;;  %vm4226_vm5 = vmpackc.low %vm1133_vm3, %vm1132_vm13 }
  0xc6   : > { %vm1131_vm0 = vcmp.eq.s32.totalorder %v1120_v49, %v4216_v41  ;;  %v4759_v58 = vsel %vm4226_vm5, 4294967295, %v4758_v58 }
  0xc7   : > { %v1136_v53 = vsel %vm1131_vm0, 1.0, %v3533_v46  ;;  %vm4221_vm1 = vmpackc.low %vm1131_vm0, %vm1130_vm12  ;;  %v1241_v0 = vpop.permute.xlu1 %1240 }
  0xc8   : > { %v4757_v54 = vsel %vm4221_vm1, 4294967295, %v4756_v54  ;;  %v1277_v12 = vadd.f32 %v1136_v53, %v1135_v47  ;;  %3225 = vmatprep.subr.msk.bf16.mxu0 %vm4221_vm1, %v3532_v31  ;;  %vm1257_vm12 = vcmp.eq.s32.totalorder %v1241_v0, %v4216_v41  ;;  %v997_v47 = vld [vmem:[#allocation6] sm:$0xff] }
  0xc9   : > { %v1129_v59 = vpop.permute.xlu0 %1128  ;;  %3226 = vmatpush3.bf16.msk.msra.mxu0 %vm4221_vm1, %v3532_v31  ;;  %v1263_v3 = vsel %vm1257_vm12, 1.0, %v3533_v46  ;;  %vm1197_vm1 = vcmp.eq.s32.totalorder %v3806_v27, %v2875_v43 }
  0xca   : > { %vm1134_vm7 = vcmp.eq.s32.totalorder %v1129_v59, %v4216_v41  ;;  %v1278_v60 = vadd.f32 %v1277_v12, %v1137_v48  ;;  %3227 = vmatprep.subr.msk.bf16.mxu0 %vm4226_vm5, %v3532_v31  ;;  %v998_v48 = vld [vmem:[#allocation6 + $0x8] sm:$0xff]  ;;  %vm2928_vm6 = vmpackc.low %vm1198_vm10, %vm1197_vm1  ;;  %vm1203_vm1 = vcmp.eq.s32.totalorder %v3893_v44, %v2875_v43 }
  0xcb   : > { %v1139_v61 = vsel %vm1134_vm7, 1.0, %v3533_v46  ;;  %v4264_v11 = vpop.permute.xlu1 %1246  ;;  %v3412_v59 = vld [vmem:[%s3714_s5 + $0x8] sm:$0xff]  }
  0xcc   : > { %v4240_v62 = vpack.c.bf16 %v1139_v61, %v1139_v61  ;;  %v1279_v63 = vadd.f32 %v1278_v60, %v1138_v57  ;;  %vm4661_vm7 = vcmp.eq.s32.totalorder %v4264_v11, %v4216_v41  ;;  %v3411_v57 = vld [vmem:[%s3714_s5] sm:$0xff]  }
  0xcd   : > { %v1244_v1 = vpop.permute.xlu0 %1243  ;;  %3228 = vmatpush3.bf16.msk.msra.mxu0 %vm4226_vm5, %v3532_v31  ;;  %v1265_v14 = vsel %vm4661_vm7, 1.0, %v3533_v46  ;;  %vm1196_vm7 = vcmp.eq.s32.totalorder %v3800_v25, %v2875_v43  ;;  %v3413_v60 = vld [vmem:[%s3709_s25] sm:$0xff]  }
  0xce   : > { %vm1258_vm13 = vcmp.eq.s32.totalorder %v1244_v1, %v4216_v41  ;;  %v4247_v2 = vadd.f32 %v1279_v63, %v1139_v61  ;;  %3373 = vmatprep.subr.msk.bf16.mxu0 %vm4658_vm9, %v4240_v62  ;;  %v4253_v4 = vsel %vm4658_vm9, %v4240_v62, 0  ;;  %vm1193_vm9 = vcmp.eq.s32.totalorder %v3784_v17, %v2875_v43  ;;  %v3414_v61 = vld [vmem:[%s3709_s25 + $0x8] sm:$0xff]  }
  0xcf   : > { %v1264_v5 = vsel %vm1258_vm13, 1.0, %v3533_v46  ;;  %vm4255_vm0 = vmpackc.low %vm1258_vm13, %vm1257_vm12  ;;  %v4281_v19 = vpop.permute.xlu1 %1252  ;;  %v4305_v17 = vpack.c.bf16 %v998_v48, %v997_v47 }
  0xd0   : > { %v1295_v8 = vadd.f32 %v1264_v5, %v1263_v3  ;;  %vm4664_vm13 = vcmp.eq.s32.totalorder %v4281_v19, %v4216_v41 }
  0xd1   : > { %v4259_v9 = vpop.permute.xlu0 %1249  ;;  %3230 = vmatpush3.bf16.msra.mxu0 %v4253_v4  ;;  %v1267_v30 = vsel %vm4664_vm13, 1.0, %v3533_v46  ;;  %3221 = vmatprep.mubr.bf16.mxu1 %v4305_v17 }
  0xd2   : > { %vm4659_vm3 = vcmp.eq.s32.totalorder %v4259_v9, %v4216_v41  ;;  %3251 = vmatprep.subr.msk.bf16.mxu0 %vm4255_vm0, %v3532_v31  ;;  %v1296_v18 = vadd.f32 %v1295_v8, %v1265_v14 }
  0xd3   : > { %v1266_v13 = vsel %vm4659_vm3, 1.0, %v3533_v46  ;;  %vm1194_vm3 = vcmp.eq.s32.totalorder %v3792_v23, %v2875_v43  ;;  %v999_v23 = vld [vmem:[#allocation6 + $0x10] sm:$0xff] }
  0xd4   : > { %v1297_v29 = vadd.f32 %v1296_v18, %v1266_v13  ;;  %vm2924_vm5 = vmpackc.low %vm1194_vm3, %vm1193_vm9  ;;  %vm1200_vm9 = vcmp.eq.s32.totalorder %v3837_v34, %v2875_v43 }
  0xd5   : > { %v4277_v16 = vpop.permute.xlu0 %1255  ;;  %3205 = vmatprep.subr.msk.bf16.mxu1 %vm2924_vm5, %v3532_v31  ;;  %vm2930_vm3 = vmpackc.low %vm1200_vm9, %vm1199_vm2  ;;  %vm1205_vm2 = vcmp.eq.s32.totalorder %v3933_v50, %v2875_v43  ;;  %vm1206_vm9 = vcmp.eq.s32.totalorder %v3936_v51, %v2875_v43 }
  0xd6   : > { %vm4660_vm12 = vcmp.eq.s32.totalorder %v4277_v16, %v4216_v41  ;;  %v1298_v35 = vadd.f32 %v1297_v29, %v1267_v30  ;;  %3206 = vmatpush3.bf16.msk.msra.mxu1 %vm2924_vm5, %v3532_v31  ;;  %vm1202_vm5 = vcmp.eq.s32.totalorder %v3854_v38, %v2875_v43 }
  0xd7   : > { %v1268_v20 = vsel %vm4660_vm12, 1.0, %v3533_v46  ;;  %vm1195_vm12 = vcmp.eq.s32.totalorder %v3797_v24, %v2875_v43  ;;  %v1000_v24 = vld [vmem:[#allocation6 + $0x18] sm:$0xff] }
  0xd8   : > { %v4291_v42 = vadd.f32 %v1298_v35, %v1268_v20  ;;  %vm2926_vm13 = vmpackc.low %vm1196_vm7, %vm1195_vm12  ;;  %vm1201_vm7 = vcmp.eq.s32.totalorder %v3851_v37, %v2875_v43  ;;  %vm1204_vm12 = vcmp.eq.s32.totalorder %v3896_v45, %v2875_v43  ;;  %v4330_v25 = vpack.c.bf16 %v1000_v24, %v999_v23 }
  0xd9   : > { %3207 = vmatprep.subr.msk.bf16.mxu1 %vm2926_vm13, %v3532_v31  ;;  %vm2932_vm10 = vmpackc.low %vm1202_vm5, %vm1201_vm7  ;;  %vm1207_vm7 = vcmp.eq.s32.totalorder %v3963_v55, %v2875_v43  ;;  %vm1208_vm5 = vcmp.eq.s32.totalorder %v3966_v56, %v2875_v43 }
  0xda   : > { %3208 = vmatpush3.bf16.msk.msra.mxu1 %vm2926_vm13, %v3532_v31  ;;  %vm2934_vm13 = vmpackc.low %vm1204_vm12, %vm1203_vm1  ;;  %vm4763_vm1 = vcmp.eq.s32.totalorder %v4264_v11, %v4216_v41  ;;  %vm4764_vm12 = vcmp.eq.s32.totalorder %v4259_v9, %v4216_v41  ;;  %v1300_v13 = vrot.slane %v4291_v42, 4 }
  0xdb   : > { %3209 = vmatprep.subr.msk.bf16.mxu1 %vm2928_vm6, %v3532_v31 }
  0xdc   : > { %v1301_v14 = vadd.f32 %v1300_v13, %v4291_v42  ;;  %v3423_v13 = vld [vmem:[%s3724_s9] sm:$0xff]  }
  0xde   : > { %3210 = vmatpush3.bf16.msk.msra.mxu1 %vm2928_vm6, %v3532_v31  ;;  %vm2936_vm6 = vmpackc.low %vm1206_vm9, %vm1205_vm2  ;;  %vm4767_vm2 = vcmp.eq.s32.totalorder %v4281_v19, %v4216_v41  ;;  %vm4768_vm9 = vcmp.eq.s32.totalorder %v4277_v16, %v4216_v41  ;;  %v1302_v29 = vrot.slane %v1301_v14, 2 }
  0xdf   : > { %3211 = vmatprep.subr.msk.bf16.mxu1 %vm2930_vm3, %v3532_v31 }
  0xe0   : > { %v1303_v23 = vadd.f32 %v1302_v29, %v1301_v14 }
  0xe2   : > { %3212 = vmatpush3.bf16.msk.msra.mxu1 %vm2930_vm3, %v3532_v31  ;;  %vm2938_vm3 = vmpackc.low %vm1208_vm5, %vm1207_vm7  ;;  %vm1747_vm7 = vcmask 392192   ;;  %vm1596_vm5 = vcmask 261120   ;;  %v1304_v42 = vrot.slane %v1303_v23, 1 }
  0xe3   : > { %3213 = vmatprep.subr.msk.bf16.mxu1 %vm2932_vm10, %v3532_v31 }
  0xe6   : > { %3214 = vmatpush3.bf16.msk.msra.mxu1 %vm2932_vm10, %v3532_v31  ;;  %vm1512_vm10 = vcmask 326656  }
  0xe7   : > { %3215 = vmatprep.subr.msk.bf16.mxu1 %vm2934_vm13, %v3532_v31 }
  0xea   : > { %3216 = vmatpush3.bf16.msk.msra.mxu1 %vm2934_vm13, %v3532_v31  ;;  %vm4346_vm13 = vmpackc.low %vm4764_vm12, %vm4763_vm1 }
  0xeb   : > { %3217 = vmatprep.subr.msk.bf16.mxu1 %vm2936_vm6, %v3532_v31 }
  0xee   : > { %3218 = vmatpush3.bf16.msk.msra.mxu1 %vm2936_vm6, %v3532_v31  ;;  %vm4362_vm6 = vmpackc.low %vm4768_vm9, %vm4767_vm2 }
  0xef   : > { %3219 = vmatprep.subr.msk.bf16.mxu1 %vm2938_vm3, %v3532_v31 }
  0xf2   : > { %3220 = vmatpush3.bf16.msk.msra.mxu1 %vm2938_vm3, %v3532_v31  ;;  %vm4776_vm3 = vcmask 1043456  }
  0xf3   : > { %3235 = vmatprep.subr.bf16.mxu1 %v3786_v21 }
  0xf5   : > { %3222 = vmatmul.mubr.bf16.vlgmr.msra.gmra.mrb[4].mxu1 %v4330_v25 }
  0xf6   : > { %3236 = vmatpush3.bf16.msra.mxu1 %v3786_v21  ;;  %3239 = vmatprep.mubr.msk.bf16.mxu1 %vm1596_vm5, %v3415_v7 }
  0xf7   : > { %3237 = vmatprep.subr.bf16.mxu1 %v4147_v26 }
  0xfa   : > { %3238 = vmatpush3.bf16.msra.mxu1 %v4147_v26 }
  0xfd   : > { %3240 = vmatmul.mubr.msk.bf16.vlgmr.msra.gmra.mrb[8].mxu1 %vm1596_vm5, %v3416_v10 }
  0xfe   : > { %3247 = vmatprep.mubr.msk.bf16.mxu1 %vm1596_vm5, %v3417_v15 }
 0x135   : > { %v3163_v27 = vpop.f32.mrb[0].mxu0 }
 0x136   : > { %v1344_v28 = vpop.f32.mrb[1].mxu0 }
 0x137   : > { %v3164_v33 = vpop.f32.mrb[2].mxu0 }
 0x138   : > { %v1511_v34 = vpack.c.bf16 %v3164_v33, %v3163_v27  ;;  %v1347_v37 = vpop.f32.mrb[3].mxu0  ;;  %v3418_v27 = vld [vmem:[%s3679_s0 + $0x8] sm:$0xff]   ;;  %v1305_v33 = vadd.f32 %v1304_v42, %v1303_v23 }
 0x139   : > { %v1510_v38 = vpack.c.bf16 %v1347_v37, %v1344_v28  ;;  %v3419_v28 = vld [vmem:[%s3699_s2] sm:$0xff]   ;;  %v3420_v37 = vld [vmem:[%s3699_s2 + $0x8] sm:$0xff]  }
 0x13a   : > { %v3183_v44 = vpop.f32.mrb[0].mxu1 }
 0x13b   : > { %3231 = vmatprep.mubr.msk.bf16.mxu0 %vm1512_vm10, %v1510_v38  ;;  %v1395_v45 = vpop.f32.mrb[1].mxu1 }
 0x13c   : > { %3232 = vmatmul.mubr.msk.bf16.vlgmr.msra.gmra.mrb[8].mxu0 %vm1512_vm10, %v1511_v34  ;;  %v3184_v51 = vpop.f32.mrb[2].mxu1 }
 0x13d   : > { %3252 = vmatpush3.bf16.msk.msra.mxu0 %vm4255_vm0, %v3532_v31  ;;  %v1980_v55 = vpack.c.bf16 %v3184_v51, %v3183_v44  ;;  %v1398_v56 = vpop.f32.mrb[3].mxu1 }
 0x13e   : > { %3253 = vmatprep.subr.msk.bf16.mxu0 %vm4346_vm13, %v3532_v31  ;;  %v1979_v26 = vpack.c.bf16 %v1398_v56, %v1395_v45 }
 0x141   : > { %3254 = vmatpush3.bf16.msk.msra.mxu0 %vm4346_vm13, %v3532_v31 }
 0x142   : > { %3255 = vmatprep.subr.msk.bf16.mxu0 %vm4362_vm6, %v3532_v31 }
 0x145   : > { %3256 = vmatpush3.bf16.msk.msra.mxu0 %vm4362_vm6, %v3532_v31 }
 0x146   : > { %3277 = vmatprep.subr.bf16.mxu0 %v1510_v38 }
 0x155   : > { %v3203_v41 = vpop.f32.mrb[4].mxu0 }
 0x156   : > { %v1444_v46 = vpop.f32.mrb[5].mxu0 }
 0x157   : > { %v3204_v49 = vpop.f32.mrb[6].mxu0 }
 0x158   : > { %v1746_v52 = vpack.c.bf16 %v3204_v49, %v3203_v41  ;;  %v1447_v53 = vpop.f32.mrb[7].mxu0 }
 0x159   : > { %v1745_v12 = vpack.c.bf16 %v1447_v53, %v1444_v46  ;;  %v2127_v53 = vpop.permute.xlu0 %2126 }
 0x15b   : > { %3257 = vmatprep.mubr.msk.bf16.mxu0 %vm1747_vm7, %v1745_v12  ;;  %v2122_v12 = vpop.permute.xlu1 %2121 }
 0x15c   : > { %3258 = vmatmul.mubr.msk.bf16.vlgmr.msra.gmra.mrb[12].mxu0 %vm1747_vm7, %v1746_v52 }
 0x15d   : > { %3278 = vmatpush3.bf16.msra.mxu0 %v1510_v38  ;;  %3281 = vmatprep.mubr.msk.bf16.mxu0 %vm1596_vm5, %v3411_v57  ;;  %v3421_v38 = vld [vmem:[%s3694_s24] sm:$0xff]  }
 0x15e   : > { %3279 = vmatprep.subr.bf16.mxu0 %v1511_v34 }
 0x161   : > { %3280 = vmatpush3.bf16.msra.mxu0 %v1511_v34  ;;  %v1306_v34 = vmax.f32 %v1305_v33, 1.0 }
 0x162   : > { %3285 = vmatprep.subr.bf16.mxu0 %v1979_v26 }
 0x164   : > { %3282 = vmatmul.mubr.msk.bf16.vlgmr.msra.gmra.mrb[16].mxu0 %vm1596_vm5, %v3412_v59  ;;  %v2137_v59 = vpop.permute.xlu0 %2136 }
 0x165   : > { %3286 = vmatpush3.bf16.msra.mxu0 %v1979_v26  ;;  %3289 = vmatprep.mubr.msk.bf16.mxu0 %vm1596_vm5, %v3413_v60 }
 0x166   : > { %3287 = vmatprep.subr.bf16.mxu0 %v1980_v55 }
 0x169   : > { %3288 = vmatpush3.bf16.msra.mxu0 %v1980_v55 }
 0x16a   : > { %3303 = vmatprep.subr.msk.bf16.mxu0 %vm4059_vm14, %v3532_v31 }
 0x170   : > { %3290 = vmatmul.mubr.msk.bf16.vlgmr.msra.gmra.mrb[16].mxu0 %vm1596_vm5, %v3414_v61  ;;  %v2132_v61 = vpop.permute.xlu1 %2131 }
 0x171   : > { %3304 = vmatpush3.bf16.msk.msra.mxu0 %vm4059_vm14, %v3532_v31  ;;  %vm4771_vm14 = vnez %v4751_v36 }
 0x172   : > { %3305 = vmatprep.subr.msk.bf16.mxu0 %vm4087_vm4, %v3532_v31 }
 0x175   : > { %3306 = vmatpush3.bf16.msk.msra.mxu0 %vm4087_vm4, %v3532_v31  ;;  %vm4772_vm4 = vnez %v4753_v39  ;;  %v1281_v39 = vrot.slane %v4247_v2, 4 }
 0x176   : > { %3307 = vmatprep.subr.msk.bf16.mxu0 %vm4114_vm8, %v3532_v31 }
 0x179   : > { %3308 = vmatpush3.bf16.msk.msra.mxu0 %vm4114_vm8, %v3532_v31  ;;  %vm4773_vm8 = vnez %v4755_v40  ;;  %v1282_v40 = vadd.f32 %v1281_v39, %v4247_v2 }
 0x17a   : > { %3309 = vmatprep.subr.msk.bf16.mxu0 %vm4136_vm11, %v3532_v31 }
 0x17b   : > { %v1283_v3 = vrot.slane %v1282_v40, 2 }
 0x17d   : > { %3310 = vmatpush3.bf16.msk.msra.mxu0 %vm4136_vm11, %v3532_v31  ;;  %v1284_v5 = vadd.f32 %v1283_v3, %v1282_v40  ;;  %vm4774_vm11 = vnez %v4757_v54 }
 0x17e   : > { %3311 = vmatprep.subr.msk.bf16.mxu0 %vm4158_vm15, %v3532_v31 }
 0x17f   : > { %v1285_v8 = vrot.slane %v1284_v5, 1 }
 0x181   : > { %3312 = vmatpush3.bf16.msk.msra.mxu0 %vm4158_vm15, %v3532_v31  ;;  %v1286_v9 = vadd.f32 %v1285_v8, %v1284_v5  ;;  %vm4775_vm15 = vnez %v4759_v58 }
 0x182   : > { %3313 = vmatprep.subr.msk.bf16.mxu0 %vm4771_vm14, %v3532_v31 }
 0x183   : > { %v1287_v11 = vmax.f32 %v1286_v9, 1.0 }
 0x185   : > { %3314 = vmatpush3.bf16.msk.msra.mxu0 %vm4771_vm14, %v3532_v31  ;;  %3429 = vrcp.f32 %v1287_v11 }
 0x186   : > { %3315 = vmatprep.subr.msk.bf16.mxu0 %vm4772_vm4, %v3532_v31  ;;  %3431 = vrcp.f32 %v1306_v34 }
 0x189   : > { %3316 = vmatpush3.bf16.msk.msra.mxu0 %vm4772_vm4, %v3532_v31 }
 0x18a   : > { %3317 = vmatprep.subr.msk.bf16.mxu0 %vm4773_vm8, %v3532_v31 }
 0x18d   : > { %3318 = vmatpush3.bf16.msk.msra.mxu0 %vm4773_vm8, %v3532_v31 }
 0x18f   : > { %v3430_v16 = vpop.eup %3429 }
 0x190   : > { %v3432_v44 = vpop.eup %3431 }
 0x1c8   : > { %v3223_v22 = vpop.f32.mrb[4].mxu1 }
 0x1c9   : > { %v1495_v32 = vpop.f32.mrb[5].mxu1 }
 0x1ca   : > { %v3224_v36 = vpop.f32.mrb[6].mxu1 }
 0x1cb   : > { %v4440_v63 = vpack.c.bf16 %v3224_v36, %v3223_v22  ;;  %v1498_v0 = vpop.f32.mrb[7].mxu1 }
 0x1cc   : > { %v4442_v1 = vpack.c.bf16 %v1498_v0, %v1495_v32 }
 0x20f   : > { %v3233_v18 = vpop.f32.mrb[8].mxu0 }
 0x210   : > { %v1574_v19 = vmul.f32 %v3430_v16, %v3233_v18  ;;  %v1557_v20 = vpop.f32.mrb[9].mxu0 }
 0x211   : > { %v1572_v30 = vmul.f32 %v3430_v16, %v1557_v20  ;;  %v3234_v35 = vpop.f32.mrb[10].mxu0 }
 0x212   : > { %v1575_v2 = vmul.f32 %v3430_v16, %v3234_v35  ;;  %v1560_v43 = vpop.f32.mrb[11].mxu0  ;;  %v3425_v35 = vld [vmem:[%s3724_s9 + $0x10] sm:$0xff]  }
 0x213   : > { %v1573_v47 = vmul.f32 %v3430_v16, %v1560_v43  ;;  %v3427_v43 = vld [vmem:[%s3729_s30] sm:$0xff]  }
 0x214   : > { %v1581_v48 = vpack.c.bf16 %v1575_v2, %v1574_v19  ;;  %v3426_v2 = vld [vmem:[%s3724_s9 + $0x18] sm:$0xff]  }
 0x215   : > { %v1580_v24 = vpack.c.bf16 %v1573_v47, %v1572_v30  ;;  %v3424_v30 = vld [vmem:[%s3724_s9 + $0x8] sm:$0xff]  }
 0x216   : > { %v3428_v47 = vld [vmem:[%s3729_s30 + $0x8] sm:$0xff]  }
 0x217   : > { %3243 = vmatprep.subr.bf16.mxu1 %v1580_v24 }
 0x218   : > { %3244 = vmatpush3.bf16.msra.mxu1 %v1580_v24 }
 0x219   : > { %3245 = vmatprep.subr.bf16.mxu1 %v1581_v48 }
 0x21c   : > { %3246 = vmatpush3.bf16.msra.mxu1 %v1581_v48 }
 0x21d   : > { %3261 = vmatprep.subr.bf16.mxu1 %v4305_v17 }
 0x21f   : > { %3248 = vmatmul.mubr.msk.bf16.vlgmr.msra.gmra.mrb[8].mxu1 %vm1596_vm5, %v3418_v27 }
 0x220   : > { %3262 = vmatpush3.bf16.msra.mxu1 %v4305_v17  ;;  %3265 = vmatprep.mubr.msk.bf16.mxu1 %vm1596_vm5, %v3419_v28 }
 0x221   : > { %3263 = vmatprep.subr.bf16.mxu1 %v4330_v25 }
 0x224   : > { %3264 = vmatpush3.bf16.msra.mxu1 %v4330_v25  ;;  %v3422_v25 = vld [vmem:[%s3694_s24 + $0x8] sm:$0xff]   ;;  %s3534_s24 = smov [#allocation4]  }
 0x225   : > { %s2621_s0 = sshll.u32 %s3534_s24, 4  ;;  %s2622_s0 = int_to_ptr.vmem [resolvable:$true] %s2621_s0 }
 0x226   : > { %s3437_s3 = scalar_lea.vmem %s2622_s0, 512  ;;  %p3444_p9 = scmp.lt.s32.totalorder %s2622_s0, %s2622_s0 }
 0x227   : > { %3266 = vmatmul.mubr.msk.bf16.vlgmr.msra.gmra.mrb[12].mxu1 %vm1596_vm5, %v3420_v37  ;;  %p3438_p6 = scmp.ne.s32.totalorder %s2622_s0, %s3437_s3  ;;  %p3445_p10 = scmp.lt.s32.totalorder %s3437_s3, %s3437_s3 }
 0x228   : > { %3273 = vmatprep.mubr.msk.bf16.mxu1 %vm1596_vm5, %v3421_v38 }
 0x229   : > { %p3439_p7 = pnand %p3438_p6, %p3387_p5  ;;  %p3446_p11 = por %p3445_p10, %p3444_p9 }
 0x22b   : > { %p3440_p8 = pneg %p3439_p7 }
 0x22d   : > { %p3447_p12 = pnand %p3446_p11, %p3440_p8 }
 0x22f   : > { %v3259_v45 = vpop.f32.mrb[12].mxu0 }
 0x230   : > { %v1805_v51 = vmul.f32 %v3432_v44, %v3259_v45  ;;  %v1788_v55 = vpop.f32.mrb[13].mxu0 }
 0x231   : > { %v1803_v17 = vmul.f32 %v3432_v44, %v1788_v55  ;;  %v3260_v56 = vpop.f32.mrb[14].mxu0 }
 0x232   : > { %v1806_v26 = vmul.f32 %v3432_v44, %v3260_v56  ;;  %v1791_v41 = vpop.f32.mrb[15].mxu0 }
 0x233   : > { %v1804_v46 = vmul.f32 %v3432_v44, %v1791_v41 }
 0x234   : > { %v1812_v49 = vpack.c.bf16 %v1806_v26, %v1805_v51 }
 0x235   : > { %v1811_v52 = vpack.c.bf16 %v1804_v46, %v1803_v17 }
 0x237   : > { %3269 = vmatprep.subr.bf16.mxu1 %v1811_v52 }
 0x238   : > { %3270 = vmatpush3.bf16.msra.mxu1 %v1811_v52 }
 0x239   : > { %3271 = vmatprep.subr.bf16.mxu1 %v1812_v49 }
 0x23c   : > { %3272 = vmatpush3.bf16.msra.mxu1 %v1812_v49 }
 0x23d   : > { %3293 = vmatprep.subr.msk.bf16.mxu1 %vm4774_vm11, %v3532_v31 }
 0x23f   : > { %3274 = vmatmul.mubr.msk.bf16.vlgmr.msra.gmra.mrb[12].mxu1 %vm1596_vm5, %v3422_v25 }
 0x240   : > { %3294 = vmatpush3.bf16.msk.msra.mxu1 %vm4774_vm11, %v3532_v31 }
 0x241   : > { %3295 = vmatprep.subr.msk.bf16.mxu1 %vm4775_vm15, %v3532_v31 }
 0x243   : > { %v3291_v57 = vpop.f32.mrb[16].mxu0 }
 0x244   : > { %v2100_v60 = vpop.f32.mrb[17].mxu0  ;;  %3296 = vmatpush3.bf16.msk.msra.mxu1 %vm4775_vm15, %v3532_v31  ;;  %v2141_v10 = vadd.f32 %v3291_v57, %v2132_v61 }
 0x245   : > { %v3292_v7 = vpop.f32.mrb[18].mxu0  ;;  %3374 = vmatprep.subr.msk.bf16.mxu1 %vm4776_vm3, %v4240_v62  ;;  %v2139_v22 = vadd.f32 %v2122_v12, %v2100_v60 }
 0x246   : > { %v2142_v15 = vadd.f32 %v3292_v7, %v2137_v59  ;;  %v2103_v54 = vpop.f32.mrb[19].mxu0 }
 0x247   : > { %v2140_v32 = vadd.f32 %v2127_v53, %v2103_v54 }
 0x248   : > { %v2144_v36 = vpack.c.bf16 %v2142_v15, %v2141_v10  ;;  %3298 = vmatpush3.bf16.msra.mxu1 %v4253_v4 }
 0x249   : > { %v2143_v39 = vpack.c.bf16 %v2140_v32, %v2139_v22 }
 0x24b   : > { %3299 = vmatprep.mubr.msk.bf16.mxu1 %vm1512_vm10, %v2143_v39 }
 0x24c   : > { %3300 = vmatmul.mubr.msk.bf16.vlgmr.msra.gmra.mrb[16].mxu1 %vm1512_vm10, %v2144_v36 }
 0x24d   : > { %3327 = vmatprep.mubr.msk.bf16.mxu1 %vm1596_vm5, %v3423_v13  ;;  %v1717_v13 = vld [vmem:[%s3689_s4] sm:$0xff] }
 0x2f2   : > { %v4478_v58 = vpop.f32.mrb[8].mxu1 }
 0x2f3   : > { %v4480_v0 = vpop.f32.mrb[9].mxu1 }
 0x2f4   : > { %v4482_v40 = vpop.f32.mrb[10].mxu1 }
 0x2f5   : > { %v4484_v62 = vpop.f32.mrb[11].mxu1 }
 0x31f   : > { %v3301_v3 = vpop.f32.mrb[16].mxu1 }
 0x320   : > { %v2185_v5 = vpop.f32.mrb[17].mxu1 }
 0x321   : > { %v3302_v8 = vpop.f32.mrb[18].mxu1 }
 0x322   : > { %v2201_v9 = vpack.c.bf16 %v3302_v8, %v3301_v3  ;;  %v2188_v4 = vpop.f32.mrb[19].mxu1 }
 0x323   : > { %v2200_v11 = vpack.c.bf16 %v2188_v4, %v2185_v5  ;;  %v2266_v4 = vld [vmem:[%s3734_s8 + $0x28] sm:$0xff] }
 0x325   : > { %3319 = vmatprep.mubr.bf16.mxu0 %v2200_v11  ;;  %v2267_v11 = vld [vmem:[%s3734_s8 + $0x30] sm:$0xff] }
 0x326   : > { %3320 = vmatmul.mubr.bf16.vlgmr.msra.gmra.mrb[20].mxu0 %v2201_v9 }
 0x3f9   : > { %v3321_v14 = vpop.f32.mrb[20].mxu0 }
 0x3fa   : > { %v2236_v16 = vpop.f32.mrb[21].mxu0 }
 0x3fb   : > { %v3322_v18 = vpop.f32.mrb[22].mxu0 }
 0x3fc   : > { %v2260_v19 = vpack.c.bf16 %v3322_v18, %v3321_v14  ;;  %v2239_v20 = vpop.f32.mrb[23].mxu0  ;;  %v1719_v14 = vld [vmem:[%s3689_s4 + $0x10] sm:$0xff] }
 0x3fd   : > { %v2259_v29 = vpack.c.bf16 %v2239_v20, %v2236_v16  ;;  %v1947_v16 = vld [vmem:[%s3704_s7] sm:$0xff]  ;;  %v1949_v18 = vld [vmem:[%s3704_s7 + $0x10] sm:$0xff] }
 0x3ff   : > { %3323 = vmatprep.subr.bf16.mxu1 %v2259_v29 }
 0x400   : > { %3324 = vmatpush3.bf16.msra.mxu1 %v2259_v29 }
 0x401   : > { %3325 = vmatprep.subr.bf16.mxu1 %v2260_v19 }
 0x404   : > { %3326 = vmatpush3.bf16.msra.mxu1 %v2260_v19 }
 0x405   : > { %3335 = vmatprep.subr.bf16.mxu1 %v4442_v1 }
 0x407   : > { %3328 = vmatmul.mubr.msk.bf16.vlgmr.msra.gmra.mrb[20].mxu1 %vm1596_vm5, %v3424_v30 }
 0x408   : > { %3336 = vmatpush3.bf16.msra.mxu1 %v4442_v1  ;;  %3331 = vmatprep.mubr.msk.bf16.mxu1 %vm1596_vm5, %v3425_v35  ;;  %v2272_v1 = vpop.permute.xlu1 %2271 }
 0x409   : > { %3337 = vmatprep.subr.bf16.mxu1 %v4440_v63 }
 0x40c   : > { %3338 = vmatpush3.bf16.msra.mxu1 %v4440_v63  ;;  %v2277_v63 = vpop.permute.xlu0 %2276  ;;  %v2419_v27 = vpop.permute.xlu1 %2418 }
 0x40d   : > { %3343 = vmatprep.subr.msk.bf16.mxu1 %vm4255_vm0, %v3532_v31 }
 0x40f   : > { %3332 = vmatmul.mubr.msk.bf16.gmra.mrb[24].mxu1 %vm1596_vm5, %v3426_v2 }
 0x410   : > { %3339 = vmatprep.mubr.msk.bf16.mxu1 %vm1596_vm5, %v3427_v43  ;;  %v2424_v42 = vpop.permute.xlu0 %2423  ;;  %v2282_v38 = vpop.permute.xlu1 %2281 }
 0x414   : > { %v2429_v34 = vpop.permute.xlu0 %2428  ;;  %v2287_v55 = vpop.permute.xlu1 %2286 }
 0x417   : > { %3340 = vmatmul.mubr.msk.bf16.vlgmr.msra.gmra.mrb[28].mxu1 %vm1596_vm5, %v3428_v47 }
 0x418   : > { %3344 = vmatpush3.bf16.msk.msra.mxu1 %vm4255_vm0, %v3532_v31  ;;  %v2434_v45 = vpop.permute.xlu0 %2433 }
 0x419   : > { %3345 = vmatprep.subr.msk.bf16.mxu1 %vm4346_vm13, %v3532_v31 }
 0x41c   : > { %3346 = vmatpush3.bf16.msk.msra.mxu1 %vm4346_vm13, %v3532_v31 }
 0x41d   : > { %3347 = vmatprep.subr.msk.bf16.mxu1 %vm4362_vm6, %v3532_v31 }
 0x420   : > { %3348 = vmatpush3.bf16.msk.msra.mxu1 %vm4362_vm6, %v3532_v31 }
 0x4da   : > { %v3329_v6 = vpop.f32.mrb[20].mxu1 }
 0x4db   : > { %v2375_v48 = vpop.f32.mrb[21].mxu1  ;;  %v2384_v50 = vadd.f32 %v3329_v6, %v2282_v38 }
 0x4dc   : > { %v3330_v23 = vpop.f32.mrb[22].mxu1  ;;  %v2376_v17 = vadd.f32 %v2375_v48, %v2272_v1 }
 0x4dd   : > { %v2378_v24 = vpop.f32.mrb[23].mxu1  ;;  %v2387_v41 = vadd.f32 %v3330_v23, %v2287_v55 }
 0x4de   : > { %v2379_v25 = vadd.f32 %v2378_v24, %v2277_v63  ;;  %v2268_v24 = vld [vmem:[%s3734_s8 + $0x38] sm:$0xff] }
 0x4e2   : > { %v3333_v28 = vpop.f32.mrb[24].mxu1 }
 0x4e3   : > { %v4520_v33 = vpop.f32.mrb[25].mxu1 }
 0x4e4   : > { %v4522_v21 = vpop.f32.mrb[26].mxu1 }
 0x4e5   : > { %v2394_v37 = vpop.f32.mrb[27].mxu1 }
 0x4ea   : > { %v3341_v44 = vpop.f32.mrb[28].mxu1 }
 0x4eb   : > { %v2495_v31 = vadd.f32 %v3341_v44, %v2429_v34  ;;  %v2486_v51 = vpop.f32.mrb[29].mxu1  ;;  %v1950_v34 = vld [vmem:[%s3704_s7 + $0x18] sm:$0xff] }
 0x4ec   : > { %v2487_v56 = vadd.f32 %v2486_v51, %v2419_v27  ;;  %v3342_v26 = vpop.f32.mrb[30].mxu1  ;;  %v1720_v27 = vld [vmem:[%s3689_s4 + $0x18] sm:$0xff] }
 0x4ed   : > { %v2503_v46 = vmul.f32 %v2495_v31, %v2384_v50  ;;  %v2498_v49 = vadd.f32 %v3342_v26, %v2434_v45  ;;  %v2489_v52 = vpop.f32.mrb[31].mxu1 }
 0x4ee   : > { %v2501_v53 = vmul.f32 %v2487_v56, %v2376_v17  ;;  %v2490_v12 = vadd.f32 %v2489_v52, %v2424_v42  ;;  %v1718_v42 = vld [vmem:[%s3689_s4 + $0x8] sm:$0xff] }
 0x4ef   : > { %v2504_v57 = vmul.f32 %v2498_v49, %v2387_v41  ;;  %v2508_v10 = vsel %vm1747_vm7, %v2503_v46, 0.0 }
 0x4f0   : > { %v2502_v59 = vmul.f32 %v2490_v12, %v2379_v25  ;;  %v2505_v60 = vsel %vm1747_vm7, %v2501_v53, 0.0 }
 0x4f1   : > { %v2510_v54 = vsel %vm1747_vm7, %v2504_v57, 0.0 }
 0x4f2   : > { %v2506_v61 = vsel %vm1747_vm7, %v2502_v59, 0.0 }
 0x4f3   : > { %v2507_v7 = vadd.f32 %v2506_v61, %v2505_v60 }
 0x4f5   : > { %v2509_v15 = vadd.f32 %v2508_v10, %v2507_v7 }
 0x4f7   : > { %v2511_v22 = vadd.f32 %v2510_v54, %v2509_v15 }
 0x4f9   : > { %v2512_v32 = vrot.slane %v2511_v22, 4 }
 0x4fb   : > { %v2513_v36 = vadd.f32 %v2512_v32, %v2511_v22 }
 0x4fd   : > { %v2514_v39 = vrot.slane %v2513_v36, 2 }
 0x4ff   : > { %v2515_v3 = vadd.f32 %v2514_v39, %v2513_v36 }
 0x501   : > { %v2516_v5 = vrot.slane %v2515_v3, 1 }
 0x503   : > { %v2517_v8 = vadd.f32 %v2516_v5, %v2515_v3 }
 0x505   : > { %v2518_v9 = vsel %vm1747_vm7, %v2517_v8, -inf }
 0x506   : > { %2519 = vmax.xlane.f32.xlu1 %v2518_v9 }
 0x517   : > { %2296 = vperm.xlu1 %3410, %v2266_v4  }
 0x51b   : > { %2301 = vperm.xlu1 %3410, %v2267_v11  }
 0x51f   : > { %1723 = vperm.xlu1 %3410, %v1717_v13  }
 0x523   : > { %1733 = vperm.xlu1 %3410, %v1719_v14  }
 0x527   : > { %1953 = vperm.xlu1 %3410, %v1947_v16  }
 0x52b   : > { %1963 = vperm.xlu1 %3410, %v1949_v18  }
 0x593   : > { %v2520_v19 = vpop.xlane.xlu1 %2519 }
 0x594   : > { %v2521_v20 = vsub.f32 %v2517_v8, %v2520_v19 }
 0x596   : > { %v2522_v29 = vmul.f32 1.442695, %v2521_v20 }
 0x597   : > { %v2297_v30 = vpop.permute.xlu1 %2296 }
 0x598   : > { %3433 = vpow2.f32 %v2522_v29  ;;  %v2395_v35 = vadd.f32 %v2394_v37, %v2297_v30 }
 0x59b   : > { %v2302_v2 = vpop.permute.xlu1 %2301 }
 0x59c   : > { %v2400_v43 = vadd.f32 %v3333_v28, %v2302_v2  ;;  %v1948_v28 = vld [vmem:[%s3704_s7 + $0x8] sm:$0xff] }
 0x59f   : > { %v1724_v47 = vpop.permute.xlu1 %1723 }
 0x5a0   : > { %v1741_v63 = vadd.f32 %v1724_v47, %v4480_v0  ;;  %v2292_v0 = vpop.permute.xlu0 %2291 }
 0x5a1   : > { %v2392_v45 = vadd.f32 %v4520_v33, %v2292_v0 }
 0x5a2   : > { %v3434_v1 = vpop.eup %3433  ;;  %2590 = vst [vmem:[#allocation4] sm:$0xff] %v1741_v63 }
 0x5a3   : > { %v1734_v6 = vpop.permute.xlu1 %1733  ;;  %v2524_v48 = vsel %vm1747_vm7, %v3434_v1, 0.0 }
 0x5a4   : > { %v1743_v23 = vadd.f32 %v4478_v58, %v1734_v6  ;;  %2525 = vadd.xlane.f32.xlu0 %v2524_v48 }
 0x5a6   : > { %2592 = vst [vmem:[#allocation4 + $0x10] sm:$0xff] %v1743_v23 }
 0x5ba   : > { %2306 = vperm.xlu0 %3409, %v2268_v24  }
 0x5be   : > { %1728 = vperm.xlu0 %3409, %v1718_v42  }
 0x5c2   : > { %1738 = vperm.xlu0 %3409, %v1720_v27  }
 0x5c6   : > { %1958 = vperm.xlu0 %3409, %v1948_v28  }
 0x5ca   : > { %1968 = vperm.xlu0 %3409, %v1950_v34  }
 0x631   : > { %v2526_v37 = vpop.xlane.xlu0 %2525 }
 0x632   : > { %3435 = vrcp.f32 %v2526_v37 }
 0x639   : > { %v2307_v38 = vpop.permute.xlu0 %2306 }
 0x63a   : > { %v2403_v50 = vadd.f32 %v4522_v21, %v2307_v38 }
 0x63c   : > { %v3436_v44 = vpop.eup %3435 }
 0x63d   : > { %v2528_v58 = vmul.f32 %v3436_v44, %v3434_v1  ;;  %v1729_v31 = vpop.permute.xlu0 %1728 }
 0x63e   : > { %v1742_v51 = vadd.f32 %v1729_v31, %v4484_v62 }
 0x63f   : > { %v2531_v55 = vmul.f32 %v2528_v58, %v2400_v43  ;;  %v2532_v17 = vmul.f32 %v2528_v58, %v2403_v50  ;;  %v2529_v56 = vmul.f32 %v2528_v58, %v2392_v45  ;;  %v2530_v26 = vmul.f32 %v2528_v58, %v2395_v35 }
 0x640   : > { %2591 = vst [vmem:[#allocation4 + $0x8] sm:$0xff] %v1742_v51 }
 0x641   : > { %v2534_v41 = vpack.c.bf16 %v2532_v17, %v2531_v55  ;;  %v1739_v46 = vpop.permute.xlu0 %1738  ;;  %v2533_v49 = vpack.c.bf16 %v2530_v26, %v2529_v56 }
 0x642   : > { %v1744_v52 = vadd.f32 %v4482_v40, %v1739_v46 }
 0x643   : > { %3349 = vmatprep.mubr.msk.bf16.mxu1 %vm1747_vm7, %v2533_v49 }
 0x644   : > { %2593 = vst [vmem:[#allocation4 + $0x18] sm:$0xff] %v1744_v52  ;;  %3350 = vmatmul.mubr.msk.bf16.vlgmr.msra.gmra.mrb[12].mxu1 %vm1747_vm7, %v2534_v41 }
 0x645   : > { %3450 = shalt.err (!%p3447_p12)
}
 0x646   : > { %s4777_s7 = sld [smem:[#allocation29_spill]] }
 0x64c   : > { %s3451_s25 = scalar_lea.hbm %s4777_s7, 512 }
 0x64d   : > { %p3452_p13 = scmp.ne.s32.totalorder %s4777_s7, %s3451_s25  ;;  %p3457_p2 = scmp.lt.u32.totalorder %s3451_s25, %s4777_s7 }
 0x64f   : > { %p3453_p0 = pnand %p3452_p13, %p3387_p5 }
 0x651   : > { %p3454_p1 = pneg %p3453_p0 }
 0x653   : > { %p3459_p3 = pnand %p3457_p2, %p3454_p1 }
 0x655   : > { %3462 = shalt.err (!%p3459_p3)
}
 0x656   : > { %s3535_s14 = smov 128   ;;  %s3536_s28 = smov 8  }
 0x657   : > { %3378 = dma.vmem_to_hbm [thread:$0]  (%p3387_p5), %s2622_s0, 512, %s4777_s7, [#allocation5], %s3535_s14, %s3535_s14, %s3536_s28  }
 0x658   : > { %s3537_s6 = smov [#allocation2]  }
 0x659   : > { %s2608_s29 = sshll.u32 %s3537_s6, 4  ;;  %s2609_s29 = int_to_ptr.vmem [resolvable:$true] %s2608_s29 }
 0x65a   : > { %s3463_s13 = scalar_lea.vmem %s2609_s29, 512  ;;  %p3470_p8 = scmp.lt.s32.totalorder %s2609_s29, %s2609_s29 }
 0x65b   : > { %p3464_p4 = scmp.ne.s32.totalorder %s2609_s29, %s3463_s13  ;;  %p3471_p9 = scmp.lt.s32.totalorder %s3463_s13, %s3463_s13 }
 0x65d   : > { %p3465_p6 = pnand %p3464_p4, %p3387_p5  ;;  %p3472_p10 = por %p3471_p9, %p3470_p8 }
 0x65f   : > { %p3466_p7 = pneg %p3465_p6 }
 0x661   : > { %p3473_p11 = pnand %p3472_p10, %p3466_p7 }
 0x663   : > { %3476 = shalt.err (!%p3473_p11)
}
 0x664   : > { %s4778_s27 = sld [smem:[#allocation28_spill]] }
 0x66a   : > { %s3477_s24 = scalar_lea.hbm %s4778_s27, 512 }
 0x66b   : > { %p3478_p12 = scmp.ne.s32.totalorder %s4778_s27, %s3477_s24  ;;  %p3483_p1 = scmp.lt.u32.totalorder %s3477_s24, %s4778_s27 }
 0x66d   : > { %p3479_p13 = pnand %p3478_p12, %p3387_p5 }
 0x66f   : > { %p3480_p0 = pneg %p3479_p13 }
 0x671   : > { %p3485_p2 = pnand %p3483_p1, %p3480_p0 }
 0x673   : > { %3488 = shalt.err (!%p3485_p2)
}
 0x674   : > { %3376 = dma.vmem_to_hbm [thread:$0]  (%p3387_p5), %s2609_s29, 512, %s4778_s27, [#allocation3], %s3535_s14, %s3535_s14, %s3536_s28   ;;  %v1954_v40 = vpop.permute.xlu1 %1953  ;;  %v1959_v62 = vpop.permute.xlu0 %1958 }
 0x675   : > { %s3538_s9 = smov [#allocation6]  }
 0x676   : > { %s2634_s30 = sshll.u32 %s3538_s9, 4  ;;  %s2635_s30 = int_to_ptr.vmem [resolvable:$true] %s2634_s30 }
 0x677   : > { %s3489_s8 = scalar_lea.vmem %s2635_s30, 512  ;;  %p3496_p7 = scmp.lt.s32.totalorder %s2635_s30, %s2635_s30 }
 0x678   : > { %v1964_v33 = vpop.permute.xlu1 %1963  ;;  %v1969_v12 = vpop.permute.xlu0 %1968  ;;  %p3490_p3 = scmp.ne.s32.totalorder %s2635_s30, %s3489_s8  ;;  %p3497_p8 = scmp.lt.s32.totalorder %s3489_s8, %s3489_s8 }
 0x67a   : > { %p3491_p4 = pnand %p3490_p3, %p3387_p5  ;;  %p3498_p9 = por %p3497_p8, %p3496_p7 }
 0x67c   : > { %p3492_p6 = pneg %p3491_p4 }
 0x67e   : > { %p3499_p10 = pnand %p3498_p9, %p3492_p6 }
 0x717   : > { %v3351_v21 = vpop.f32.mrb[12].mxu1 }
 0x718   : > { %v3353_v25 = vadd.f32 %v3351_v21, %v1964_v33  ;;  %v2575_v53 = vpop.f32.mrb[13].mxu1 }
 0x719   : > { %v3354_v57 = vadd.f32 %v2575_v53, %v1954_v40  ;;  %v3352_v59 = vpop.f32.mrb[14].mxu1 }
 0x71a   : > { %2600 = vst [vmem:[#allocation6 + $0x10] sm:$0xff] %v3353_v25  ;;  %v3355_v60 = vadd.f32 %v3352_v59, %v1969_v12  ;;  %v2578_v61 = vpop.f32.mrb[15].mxu1 }
 0x71b   : > { %2598 = vst [vmem:[#allocation6] sm:$0xff] %v3354_v57  ;;  %v3356_v7 = vadd.f32 %v2578_v61, %v1959_v62 }
 0x71c   : > { %2601 = vst [vmem:[#allocation6 + $0x18] sm:$0xff] %v3355_v60 }
 0x71d   : > { %2599 = vst [vmem:[#allocation6 + $0x8] sm:$0xff] %v3356_v7 }
 0x71e   : > { %3502 = shalt.err (!%p3499_p10)
}
 0x71f   : > { %s4779_s6 = sld [smem:[#allocation30_spill]] }
 0x725   : > { %s3503_s29 = scalar_lea.hbm %s4779_s6, 512 }
 0x726   : > { %p3504_p11 = scmp.ne.s32.totalorder %s4779_s6, %s3503_s29  ;;  %p3509_p0 = scmp.lt.u32.totalorder %s3503_s29, %s4779_s6 }
 0x728   : > { %p3505_p12 = pnand %p3504_p11, %p3387_p5 }
 0x72a   : > { %p3506_p13 = pneg %p3505_p12 }
 0x72c   : > { %p3511_p1 = pnand %p3509_p0, %p3506_p13 }
 0x72e   : > { %3514 = shalt.err (!%p3511_p1)
}
 0x72f   : > { %3380 = dma.vmem_to_hbm [thread:$0]  (%p3387_p5), %s2635_s30, 512, %s4779_s6, [#allocation5], %s3535_s14, %s3535_s14, %s3536_s28  }
 0x730   : > { %3520 = dma.done.wait (%p3387_p5), [#allocation3], 512  }
 0x731   : > { %3522 = vsyncadd (%p3387_p5), [#allocation3], 4294966784 }
 0x732   : > { %3524 = dma.done.wait (%p3387_p5), [#allocation5], 1024  }
 0x733   : > { %3526 = vsyncadd (%p3387_p5), [#allocation5], 4294966272 }
 0x734 PF: > { %s4780_s4 = sld [smem:[#allocation9_spill]] }
 0x73a   : > { %s37_s5 = sadd.s32 1, %s4780_s4  }
 0x73b   : > { %p34_p2 = scmp.ge.s32.totalorder %s37_s5, 4  }
 0x73d   :  { %36 = sbr.rel (!%p34_p2) target bundleno = 24 (0x18), region = 191 }
 0x744   :  { %2658 = vsyncpa [#allocation3], 1 }
 0x745   :  { %2660 = vsyncpa [#allocation3 + $0x1], 1 }
 0x746   :  { %2661 = vsyncpa [#allocation5], 1 }

</bundles_post_ra>
